<compile_context>
chip_gen: v5e
topology: v5e:2x2
jax: 0.10.0
libtpu: 0.0.40
codegen_flags: <defaults>
</compile_context>

<pallas_src>
import math
import numpy as np
import jax
import jax.numpy as jnp
from jax.experimental import pallas as pl
from jax.experimental.pallas import tpu as pltpu


def positional_encoding(seq_len, d_model):
    position = np.arange(seq_len, dtype=np.float32)[:, None]
    div_term = np.exp(np.arange(0, d_model, 2, dtype=np.float32)
                      * (-math.log(10000.0) / d_model))
    pe = np.zeros((seq_len, d_model), dtype=np.float32)
    pe[:, 0::2] = np.sin(position * div_term)
    pe[:, 1::2] = np.cos(position * div_term)
    return jnp.asarray(pe)


def _layer_norm(x, g, b, eps=1e-5):
    mu = jnp.mean(x, axis=-1, keepdims=True)
    var = jnp.mean((x - mu) ** 2, axis=-1, keepdims=True)
    return (x - mu) * jax.lax.rsqrt(var + eps) * g + b


def make_fused_encoder(batch, seq, d_model, n_layers, n_heads, d_k, d_v, d_ff):
    scale = 1.0 / math.sqrt(d_k)
    n_last = min(3, n_layers)          # PyTorch stacks [-3:] then means
    first_kept = n_layers - n_last

    def kernel(x_ref, pe_ref, pad_ref,
               wq_ref, bq_ref, wk_ref, bk_ref, wv_ref, bv_ref,
               wo_ref, bo_ref, g1_ref, be1_ref,
               w1_ref, b1_ref, w2_ref, b2_ref, g2_ref, be2_ref,
               out_ref, attn_ref, outlist_ref):
        # PositionalEncoding fused in.
        # TODO(synk): nn.Dropout(p=0.1) in PositionalEncoding treated as identity (eval-mode).
        x = x_ref[0] + pe_ref[...]                                  # [S, D] f32

        # get_attn_pad_mask: True where key token id == 0; broadcast once (hoisted).
        is_pad = jnp.broadcast_to(pad_ref[0] > 0.5, (seq, seq))     # [S, S] bool

        attn_acc = [jnp.zeros((seq, seq), jnp.float32) for _ in range(n_heads)]
        out_acc = jnp.zeros((seq, d_model), jnp.float32)

        for l in range(n_layers):
            xb = x.astype(jnp.bfloat16)
            q = jnp.dot(xb, wq_ref[l], preferred_element_type=jnp.float32) + bq_ref[l]
            k = jnp.dot(xb, wk_ref[l], preferred_element_type=jnp.float32) + bk_ref[l]
            v = jnp.dot(xb, wv_ref[l], preferred_element_type=jnp.float32) + bv_ref[l]

            ctx_parts = []
            attn_heads = []
            for h in range(n_heads):
                qh = q[:, h * d_k:(h + 1) * d_k].astype(jnp.bfloat16)
                kh = k[:, h * d_k:(h + 1) * d_k].astype(jnp.bfloat16)
                vh = v[:, h * d_v:(h + 1) * d_v].astype(jnp.bfloat16)
                # q @ k^T without materializing a transpose.
                s = jnp.einsum('qd,kd->qk', qh, kh,
                               preferred_element_type=jnp.float32) * scale
                s = jnp.where(is_pad, -1e9, s)        # masked_fill_(attn_mask, -1e9)
                s = s - jnp.max(s, axis=-1, keepdims=True)
                e = jnp.exp(s)
                inv = pl.reciprocal(jnp.sum(e, axis=-1, keepdims=True), approx=True)
                attn = e * inv
                attn_heads.append(attn)
                ctx_parts.append(
                    jnp.dot(attn.astype(jnp.bfloat16), vh,
                            preferred_element_type=jnp.float32))      # [S, d_v]

            # Single output projection over the concatenated heads.
            ctx_all = jnp.concatenate(ctx_parts, axis=-1).astype(jnp.bfloat16)
            proj = jnp.dot(ctx_all, wo_ref[l],
                           preferred_element_type=jnp.float32) + bo_ref[l]

            # Add & Norm (attention block)
            y = _layer_norm(proj + x, g1_ref[l], be1_ref[l])

            # Position-wise FFN: Conv1d(k=1) -> ReLU -> Conv1d(k=1), as matmuls.
            h1 = jnp.maximum(
                jnp.dot(y.astype(jnp.bfloat16), w1_ref[l],
                        preferred_element_type=jnp.float32) + b1_ref[l], 0.0)
            h2 = jnp.dot(h1.astype(jnp.bfloat16), w2_ref[l],
                         preferred_element_type=jnp.float32) + b2_ref[l]

            # Add & Norm (FFN block)
            x = _layer_norm(h2 + y, g2_ref[l], be2_ref[l])

            if l >= first_kept:      # accumulate last-3-layer means in VMEM
                out_acc = out_acc + x
                for h in range(n_heads):
                    attn_acc[h] = attn_acc[h] + attn_heads[h]

        inv_n = 1.0 / float(n_last)
        out_ref[0] = x
        outlist_ref[0] = out_acc * inv_n
        for h in range(n_heads):
            attn_ref[0, h] = attn_acc[h] * inv_n

    def call(x, pe, pad_f, stacked_params):
        # Full-extent blocks for every (small) parameter tensor.
        param_specs = [pl.BlockSpec(p.shape, lambda b, n=p.ndim: (0,) * n)
                       for p in stacked_params]
        return pl.pallas_call(
            kernel,
            out_shape=(jax.ShapeDtypeStruct((batch, seq, d_model), jnp.float32),
                       jax.ShapeDtypeStruct((batch, n_heads, seq, seq), jnp.float32),
                       jax.ShapeDtypeStruct((batch, seq, d_model), jnp.float32)),
            grid_spec=pltpu.PrefetchScalarGridSpec(
                num_scalar_prefetch=0,
                grid=(batch,),
                in_specs=[pl.BlockSpec((1, seq, d_model), lambda b: (b, 0, 0)),
                          pl.BlockSpec((seq, d_model), lambda b: (0, 0)),
                          pl.BlockSpec((1, 1, seq), lambda b: (b, 0, 0))]
                         + param_specs,
                out_specs=(pl.BlockSpec((1, seq, d_model), lambda b: (b, 0, 0)),
                           pl.BlockSpec((1, n_heads, seq, seq),
                                        lambda b: (b, 0, 0, 0)),
                           pl.BlockSpec((1, seq, d_model), lambda b: (b, 0, 0))),
            ),
            compiler_params=pltpu.CompilerParams(
                dimension_semantics=("parallel",)),   # v7x: 2 TCs split the batch
        )(x, pe, pad_f, *stacked_params)

    return call


# Per-layer param list order (matches kernel ref order):
#   [wq, bq, wk, bk, wv, bv, wo, bo, g1, be1, w1, b1, w2, b2, g2, be2]
_WEIGHT_IDX = (0, 2, 4, 6, 10, 12)   # matmul weights -> bf16 (MXU native), acc stays f32


def init_layer_params(key, d_model, n_heads, d_k, d_v, d_ff):
    """Deterministic init mimicking PyTorch Linear/Conv1d default (uniform +-1/sqrt(fan_in))."""
    ks = jax.random.split(key, 6)

    def lin(k, din, dout):
        kw, kb = jax.random.split(k)
        bound = 1.0 / math.sqrt(din)
        w = jax.random.uniform(kw, (din, dout), jnp.float32, -bound, bound)
        b = jax.random.uniform(kb, (1, dout), jnp.float32, -bound, bound)
        return w, b

    wq, bq = lin(ks[0], d_model, n_heads * d_k)
    wk, bk = lin(ks[1], d_model, n_heads * d_k)
    wv, bv = lin(ks[2], d_model, n_heads * d_v)
    wo, bo = lin(ks[3], n_heads * d_v, d_model)
    # NOTE: porting real PyTorch Conv1d(k=1) weights [out, in, 1] requires squeezing
    # and transposing to the [in, out] convention used here.
    w1, b1 = lin(ks[4], d_model, d_ff)     # conv1 (kernel_size=1) as matmul
    w2, b2 = lin(ks[5], d_ff, d_model)     # conv2 (kernel_size=1) as matmul
    g1 = jnp.ones((1, d_model), jnp.float32)
    be1 = jnp.zeros((1, d_model), jnp.float32)
    g2 = jnp.ones((1, d_model), jnp.float32)
    be2 = jnp.zeros((1, d_model), jnp.float32)
    return [wq, bq, wk, bk, wv, bv, wo, bo, g1, be1, w1, b1, w2, b2, g2, be2]


def stack_layer_params(all_params):
    """Stack per-layer params along a leading layer axis so all layers feed one kernel."""
    n_params = len(all_params[0])
    stacked = []
    for i in range(n_params):
        p = jnp.stack([lp[i] for lp in all_params], axis=0)   # [n_layers, ...]
        if i in _WEIGHT_IDX:
            p = p.astype(jnp.bfloat16)
        stacked.append(p)
    return stacked


def encoder_forward(enc_inputs, word_seq, stacked_params,
                    d_model, n_layers, n_heads, d_k, d_v, d_ff):
    B, S, _ = enc_inputs.shape
    pe = positional_encoding(S, d_model)
    # get_attn_pad_mask: 1.0 where key token id == 0; query-dim broadcast done in-kernel.
    pad_f = (word_seq == 0).astype(jnp.float32)[:, None, :]   # [B, 1, S]
    fused = make_fused_encoder(B, S, d_model, n_layers, n_heads, d_k, d_v, d_ff)
    enc_outputs, enc_self_attn, enc_outputs_list = fused(
        enc_inputs, pe, pad_f, stacked_params)
    return enc_outputs, enc_self_attn, enc_outputs_list


def encoder_reference(enc_inputs, word_seq, stacked_params,
                      d_model, n_layers, n_heads, d_k, d_v, d_ff):
    """Pure-JAX mirror of the PyTorch Encoder forward (same bf16 weight quantization)."""
    (wq, bq, wk, bk, wv, bv, wo, bo, g1, be1,
     w1, b1, w2, b2, g2, be2) = stacked_params
    B, S, _ = enc_inputs.shape
    scale = 1.0 / math.sqrt(d_k)
    n_last = min(3, n_layers)
    pe = positional_encoding(S, d_model)

    x = enc_inputs + pe[None]                       # [B,S,D]
    is_pad = (word_seq == 0)[:, None, :]            # [B,1,S]
    attns, outs = [], []
    for l in range(n_layers):
        xb = x.astype(jnp.bfloat16)
        q = jnp.einsum('bsd,de->bse', xb, wq[l],
                       preferred_element_type=jnp.float32) + bq[l]
        k = jnp.einsum('bsd,de->bse', xb, wk[l],
                       preferred_element_type=jnp.float32) + bk[l]
        v = jnp.einsum('bsd,de->bse', xb, wv[l],
                       preferred_element_type=jnp.float32) + bv[l]
        ctxs, attn_h = [], []
        for h in range(n_heads):
            qh = q[..., h * d_k:(h + 1) * d_k].astype(jnp.bfloat16)
            kh = k[..., h * d_k:(h + 1) * d_k].astype(jnp.bfloat16)
            vh = v[..., h * d_v:(h + 1) * d_v].astype(jnp.bfloat16)
            s = jnp.einsum('bqd,bkd->bqk', qh, kh,
                           preferred_element_type=jnp.float32) * scale
            s = jnp.where(jnp.broadcast_to(is_pad, s.shape), -1e9, s)
            s = s - jnp.max(s, axis=-1, keepdims=True)
            e = jnp.exp(s)
            a = e / jnp.sum(e, axis=-1, keepdims=True)
            attn_h.append(a)
            ctxs.append(jnp.einsum('bqk,bkd->bqd', a.astype(jnp.bfloat16), vh,
                                   preferred_element_type=jnp.float32))
        ctx = jnp.concatenate(ctxs, axis=-1).astype(jnp.bfloat16)
        proj = jnp.einsum('bsd,de->bse', ctx, wo[l],
                          preferred_element_type=jnp.float32) + bo[l]
        y = _layer_norm(proj + x, g1[l], be1[l])
        h1 = jnp.maximum(
            jnp.einsum('bsd,df->bsf', y.astype(jnp.bfloat16), w1[l],
                       preferred_element_type=jnp.float32) + b1[l], 0.0)
        h2 = jnp.einsum('bsf,fd->bsd', h1.astype(jnp.bfloat16), w2[l],
                        preferred_element_type=jnp.float32) + b2[l]
        x = _layer_norm(h2 + y, g2[l], be2[l])
        attns.append(jnp.stack(attn_h, axis=1))     # [B,H,S,S]
        outs.append(x)
    attn_mean = jnp.mean(jnp.stack(attns[-n_last:], axis=1), axis=1)
    out_mean = jnp.mean(jnp.stack(outs[-n_last:], axis=1), axis=1)
    return x, attn_mean, out_mean


if __name__ == "__main__":
    B, S = 2, 8
    d_model, n_layers, n_heads, d_k, d_v, d_ff = 32, 3, 2, 16, 16, 64

    key = jax.random.PRNGKey(0)
    k_in, k_p = jax.random.split(key)
    enc_inputs = jax.random.normal(k_in, (B, S, d_model), jnp.float32)
    word_seq = jnp.array([[5, 3, 9, 2, 7, 1, 0, 0],
                          [4, 8, 6, 2, 0, 0, 0, 0]], dtype=jnp.int32)

    layer_keys = jax.random.split(k_p, n_layers)
    all_params = [init_layer_params(k, d_model, n_heads, d_k, d_v, d_ff)
                  for k in layer_keys]
    stacked_params = stack_layer_params(all_params)

    enc_outputs, enc_self_attn, enc_outputs_list = encoder_forward(
        enc_inputs, word_seq, stacked_params,
        d_model, n_layers, n_heads, d_k, d_v, d_ff)
    jax.block_until_ready((enc_outputs, enc_self_attn, enc_outputs_list))

    assert enc_outputs.shape == (B, S, d_model)
    assert enc_self_attn.shape == (B, n_heads, S, S)
    assert enc_outputs_list.shape == (B, S, d_model)

    # Correctness check against a pure-JAX reference (same bf16 weight casts; the
    # only deltas are accumulation order and the EUP approx reciprocal in softmax).
    ref_out, ref_attn, ref_list = encoder_reference(
        enc_inputs, word_seq, stacked_params,
        d_model, n_layers, n_heads, d_k, d_v, d_ff)
    jax.block_until_ready((ref_out, ref_attn, ref_list))
    assert float(jnp.max(jnp.abs(enc_outputs - ref_out))) < 7.5e-2
    assert float(jnp.max(jnp.abs(enc_self_attn - ref_attn))) < 7.5e-2
    assert float(jnp.max(jnp.abs(enc_outputs_list - ref_list))) < 7.5e-2

    print("KERNEL_OK")
</pallas_src>

<mosaic_0001>
module attributes {stable_mosaic.version = 11 : i64} {
  func.func @kernel(%arg0: i32, %arg1: memref<1x8x32xf32, #tpu.memory_space<vmem>>, %arg2: memref<8x32xf32, #tpu.memory_space<vmem>>, %arg3: memref<1x1x8xf32, #tpu.memory_space<vmem>>, %arg4: memref<3x32x32xbf16, #tpu.memory_space<vmem>>, %arg5: memref<3x1x32xf32, #tpu.memory_space<vmem>>, %arg6: memref<3x32x32xbf16, #tpu.memory_space<vmem>>, %arg7: memref<3x1x32xf32, #tpu.memory_space<vmem>>, %arg8: memref<3x32x32xbf16, #tpu.memory_space<vmem>>, %arg9: memref<3x1x32xf32, #tpu.memory_space<vmem>>, %arg10: memref<3x32x32xbf16, #tpu.memory_space<vmem>>, %arg11: memref<3x1x32xf32, #tpu.memory_space<vmem>>, %arg12: memref<3x1x32xf32, #tpu.memory_space<vmem>>, %arg13: memref<3x1x32xf32, #tpu.memory_space<vmem>>, %arg14: memref<3x32x64xbf16, #tpu.memory_space<vmem>>, %arg15: memref<3x1x64xf32, #tpu.memory_space<vmem>>, %arg16: memref<3x64x32xbf16, #tpu.memory_space<vmem>>, %arg17: memref<3x1x32xf32, #tpu.memory_space<vmem>>, %arg18: memref<3x1x32xf32, #tpu.memory_space<vmem>>, %arg19: memref<3x1x32xf32, #tpu.memory_space<vmem>>, %arg20: memref<1x8x32xf32, #tpu.memory_space<vmem>>, %arg21: memref<1x2x8x8xf32, #tpu.memory_space<vmem>>, %arg22: memref<1x8x32xf32, #tpu.memory_space<vmem>>) attributes {dimension_semantics = [#tpu.dimension_semantics<parallel>], iteration_bounds = array<i64: 2>, scalar_prefetch = 0 : i64, scratch_operands = 0 : i64, tpu.core_type = #tpu.core_type<tc>, window_params = [{transform_indices = @transform_0, window_bounds = array<i64: 1, 8, 32>}, {pipeline_mode = #tpu.pipeline_mode<synchronous>, transform_indices = @transform_1, window_bounds = array<i64: 8, 32>}, {transform_indices = @transform_2, window_bounds = array<i64: 1, 1, 8>}, {pipeline_mode = #tpu.pipeline_mode<synchronous>, transform_indices = @transform_3, window_bounds = array<i64: 3, 32, 32>}, {pipeline_mode = #tpu.pipeline_mode<synchronous>, transform_indices = @transform_4, window_bounds = array<i64: 3, 1, 32>}, {pipeline_mode = #tpu.pipeline_mode<synchronous>, transform_indices = @transform_5, window_bounds = array<i64: 3, 32, 32>}, {pipeline_mode = #tpu.pipeline_mode<synchronous>, transform_indices = @transform_6, window_bounds = array<i64: 3, 1, 32>}, {pipeline_mode = #tpu.pipeline_mode<synchronous>, transform_indices = @transform_7, window_bounds = array<i64: 3, 32, 32>}, {pipeline_mode = #tpu.pipeline_mode<synchronous>, transform_indices = @transform_8, window_bounds = array<i64: 3, 1, 32>}, {pipeline_mode = #tpu.pipeline_mode<synchronous>, transform_indices = @transform_9, window_bounds = array<i64: 3, 32, 32>}, {pipeline_mode = #tpu.pipeline_mode<synchronous>, transform_indices = @transform_10, window_bounds = array<i64: 3, 1, 32>}, {pipeline_mode = #tpu.pipeline_mode<synchronous>, transform_indices = @transform_11, window_bounds = array<i64: 3, 1, 32>}, {pipeline_mode = #tpu.pipeline_mode<synchronous>, transform_indices = @transform_12, window_bounds = array<i64: 3, 1, 32>}, {pipeline_mode = #tpu.pipeline_mode<synchronous>, transform_indices = @transform_13, window_bounds = array<i64: 3, 32, 64>}, {pipeline_mode = #tpu.pipeline_mode<synchronous>, transform_indices = @transform_14, window_bounds = array<i64: 3, 1, 64>}, {pipeline_mode = #tpu.pipeline_mode<synchronous>, transform_indices = @transform_15, window_bounds = array<i64: 3, 64, 32>}, {pipeline_mode = #tpu.pipeline_mode<synchronous>, transform_indices = @transform_16, window_bounds = array<i64: 3, 1, 32>}, {pipeline_mode = #tpu.pipeline_mode<synchronous>, transform_indices = @transform_17, window_bounds = array<i64: 3, 1, 32>}, {pipeline_mode = #tpu.pipeline_mode<synchronous>, transform_indices = @transform_18, window_bounds = array<i64: 3, 1, 32>}, {transform_indices = @transform_19, window_bounds = array<i64: 1, 8, 32>}, {transform_indices = @transform_20, window_bounds = array<i64: 1, 2, 8, 8>}, {transform_indices = @transform_21, window_bounds = array<i64: 1, 8, 32>}]} {
    %c0 = arith.constant 0 : index
    %c0_0 = arith.constant 0 : index
    %c0_1 = arith.constant 0 : index
    %0 = vector.load %arg1[%c0, %c0_0, %c0_1] : memref<1x8x32xf32, #tpu.memory_space<vmem>>, vector<1x8x32xf32>
    %1 = vector.shape_cast %0 : vector<1x8x32xf32> to vector<8x32xf32>
    %c0_2 = arith.constant 0 : index
    %c0_3 = arith.constant 0 : index
    %2 = vector.load %arg2[%c0_2, %c0_3] : memref<8x32xf32, #tpu.memory_space<vmem>>, vector<8x32xf32>
    %3 = arith.addf %1, %2 : vector<8x32xf32>
    %c0_4 = arith.constant 0 : index
    %c0_5 = arith.constant 0 : index
    %c0_6 = arith.constant 0 : index
    %4 = vector.load %arg3[%c0_4, %c0_5, %c0_6] : memref<1x1x8xf32, #tpu.memory_space<vmem>>, vector<1x1x8xf32>
    %5 = vector.shape_cast %4 : vector<1x1x8xf32> to vector<1x8xf32>
    %cst = arith.constant 5.000000e-01 : f32
    %6 = vector.broadcast %cst : f32 to vector<1x8xf32>
    %7 = arith.cmpf ogt, %5, %6 : vector<1x8xf32>
    %8 = vector.shape_cast %7 : vector<1x8xi1> to vector<1x8xi1>
    %9 = vector.broadcast %8 : vector<1x8xi1> to vector<8x8xi1>
    %cst_7 = arith.constant 0.000000e+00 : f32
    %10 = vector.broadcast %cst_7 : f32 to vector<8x8xf32>
    %cst_8 = arith.constant 0.000000e+00 : f32
    %11 = vector.broadcast %cst_8 : f32 to vector<8x8xf32>
    %cst_9 = arith.constant 0.000000e+00 : f32
    %12 = vector.broadcast %cst_9 : f32 to vector<8x32xf32>
    %13 = arith.truncf %3 : vector<8x32xf32> to vector<8x32xbf16>
    %c0_10 = arith.constant 0 : index
    %c0_11 = arith.constant 0 : index
    %c0_12 = arith.constant 0 : index
    %14 = vector.load %arg4[%c0_10, %c0_11, %c0_12] : memref<3x32x32xbf16, #tpu.memory_space<vmem>>, vector<1x32x32xbf16>
    %15 = vector.shape_cast %14 : vector<1x32x32xbf16> to vector<32x32xbf16>
    %cst_13 = arith.constant dense<0.000000e+00> : vector<8x32xf32>
    %16 = tpu.matmul %13, %15, %cst_13 {dimension_numbers = #tpu.dot_dimension_numbers<[1], [0], [0], [1], [0, 0, 1, 1], [], []>} : vector<8x32xbf16>, vector<32x32xbf16>, vector<8x32xf32> -> vector<8x32xf32>
    %c0_14 = arith.constant 0 : index
    %c0_15 = arith.constant 0 : index
    %c0_16 = arith.constant 0 : index
    %17 = vector.load %arg5[%c0_14, %c0_15, %c0_16] : memref<3x1x32xf32, #tpu.memory_space<vmem>>, vector<1x1x32xf32>
    %18 = vector.shape_cast %17 : vector<1x1x32xf32> to vector<1x32xf32>
    %19 = vector.broadcast %18 : vector<1x32xf32> to vector<8x32xf32>
    %20 = arith.addf %16, %19 : vector<8x32xf32>
    %c0_17 = arith.constant 0 : index
    %c0_18 = arith.constant 0 : index
    %c0_19 = arith.constant 0 : index
    %21 = vector.load %arg6[%c0_17, %c0_18, %c0_19] : memref<3x32x32xbf16, #tpu.memory_space<vmem>>, vector<1x32x32xbf16>
    %22 = vector.shape_cast %21 : vector<1x32x32xbf16> to vector<32x32xbf16>
    %cst_20 = arith.constant dense<0.000000e+00> : vector<8x32xf32>
    %23 = tpu.matmul %13, %22, %cst_20 {dimension_numbers = #tpu.dot_dimension_numbers<[1], [0], [0], [1], [0, 0, 1, 1], [], []>} : vector<8x32xbf16>, vector<32x32xbf16>, vector<8x32xf32> -> vector<8x32xf32>
    %c0_21 = arith.constant 0 : index
    %c0_22 = arith.constant 0 : index
    %c0_23 = arith.constant 0 : index
    %24 = vector.load %arg7[%c0_21, %c0_22, %c0_23] : memref<3x1x32xf32, #tpu.memory_space<vmem>>, vector<1x1x32xf32>
    %25 = vector.shape_cast %24 : vector<1x1x32xf32> to vector<1x32xf32>
    %26 = vector.broadcast %25 : vector<1x32xf32> to vector<8x32xf32>
    %27 = arith.addf %23, %26 : vector<8x32xf32>
    %c0_24 = arith.constant 0 : index
    %c0_25 = arith.constant 0 : index
    %c0_26 = arith.constant 0 : index
    %28 = vector.load %arg8[%c0_24, %c0_25, %c0_26] : memref<3x32x32xbf16, #tpu.memory_space<vmem>>, vector<1x32x32xbf16>
    %29 = vector.shape_cast %28 : vector<1x32x32xbf16> to vector<32x32xbf16>
    %cst_27 = arith.constant dense<0.000000e+00> : vector<8x32xf32>
    %30 = tpu.matmul %13, %29, %cst_27 {dimension_numbers = #tpu.dot_dimension_numbers<[1], [0], [0], [1], [0, 0, 1, 1], [], []>} : vector<8x32xbf16>, vector<32x32xbf16>, vector<8x32xf32> -> vector<8x32xf32>
    %c0_28 = arith.constant 0 : index
    %c0_29 = arith.constant 0 : index
    %c0_30 = arith.constant 0 : index
    %31 = vector.load %arg9[%c0_28, %c0_29, %c0_30] : memref<3x1x32xf32, #tpu.memory_space<vmem>>, vector<1x1x32xf32>
    %32 = vector.shape_cast %31 : vector<1x1x32xf32> to vector<1x32xf32>
    %33 = vector.broadcast %32 : vector<1x32xf32> to vector<8x32xf32>
    %34 = arith.addf %30, %33 : vector<8x32xf32>
    %35 = vector.extract_strided_slice %20 {offsets = [0, 0], sizes = [8, 16], strides = [1, 1]} : vector<8x32xf32> to vector<8x16xf32>
    %36 = arith.truncf %35 : vector<8x16xf32> to vector<8x16xbf16>
    %37 = vector.extract_strided_slice %27 {offsets = [0, 0], sizes = [8, 16], strides = [1, 1]} : vector<8x32xf32> to vector<8x16xf32>
    %38 = arith.truncf %37 : vector<8x16xf32> to vector<8x16xbf16>
    %39 = vector.extract_strided_slice %34 {offsets = [0, 0], sizes = [8, 16], strides = [1, 1]} : vector<8x32xf32> to vector<8x16xf32>
    %40 = arith.truncf %39 : vector<8x16xf32> to vector<8x16xbf16>
    "tpu.trace_start"() <{level = 10 : i32, message = "qd,kd->qk"}> : () -> ()
    %cst_31 = arith.constant dense<0.000000e+00> : vector<8x8xf32>
    %41 = tpu.matmul %36, %38, %cst_31 {dimension_numbers = #tpu.dot_dimension_numbers<[1], [1], [0], [0], [0, 0, 1, 0], [], []>} : vector<8x16xbf16>, vector<8x16xbf16>, vector<8x8xf32> -> vector<8x8xf32>
    "tpu.trace_stop"() : () -> ()
    %cst_32 = arith.constant 2.500000e-01 : f32
    %42 = vector.broadcast %cst_32 : f32 to vector<8x8xf32>
    %43 = arith.mulf %41, %42 : vector<8x8xf32>
    %cst_33 = arith.constant -1.000000e+09 : f32
    %44 = vector.broadcast %cst_33 : f32 to vector<8x8xf32>
    %45 = arith.select %9, %44, %43 : vector<8x8xi1>, vector<8x8xf32>
    %cst_34 = arith.constant dense<0xFF800000> : vector<8xf32>
    %46 = vector.multi_reduction <maximumf>, %45, %cst_34 [1] : vector<8x8xf32> to vector<8xf32>
    %47 = vector.shape_cast %46 : vector<8xf32> to vector<8x1xf32>
    %48 = vector.broadcast %47 : vector<8x1xf32> to vector<8x8xf32>
    %49 = arith.subf %45, %48 : vector<8x8xf32>
    %50 = math.exp %49 : vector<8x8xf32>
    %cst_35 = arith.constant dense<0.000000e+00> : vector<8xf32>
    %51 = vector.multi_reduction <add>, %50, %cst_35 [1] : vector<8x8xf32> to vector<8xf32>
    %52 = vector.shape_cast %51 : vector<8xf32> to vector<8x1xf32>
    %53 = tpu.reciprocal %52 {approx = true} : vector<8x1xf32> -> vector<8x1xf32>
    %54 = vector.broadcast %53 : vector<8x1xf32> to vector<8x8xf32>
    %55 = arith.mulf %50, %54 : vector<8x8xf32>
    %56 = arith.truncf %55 : vector<8x8xf32> to vector<8x8xbf16>
    %cst_36 = arith.constant dense<0.000000e+00> : vector<8x16xf32>
    %57 = tpu.matmul %56, %40, %cst_36 {dimension_numbers = #tpu.dot_dimension_numbers<[1], [0], [0], [1], [0, 0, 1, 1], [], []>} : vector<8x8xbf16>, vector<8x16xbf16>, vector<8x16xf32> -> vector<8x16xf32>
    %58 = vector.extract_strided_slice %20 {offsets = [0, 16], sizes = [8, 16], strides = [1, 1]} : vector<8x32xf32> to vector<8x16xf32>
    %59 = arith.truncf %58 : vector<8x16xf32> to vector<8x16xbf16>
    %60 = vector.extract_strided_slice %27 {offsets = [0, 16], sizes = [8, 16], strides = [1, 1]} : vector<8x32xf32> to vector<8x16xf32>
    %61 = arith.truncf %60 : vector<8x16xf32> to vector<8x16xbf16>
    %62 = vector.extract_strided_slice %34 {offsets = [0, 16], sizes = [8, 16], strides = [1, 1]} : vector<8x32xf32> to vector<8x16xf32>
    %63 = arith.truncf %62 : vector<8x16xf32> to vector<8x16xbf16>
    "tpu.trace_start"() <{level = 10 : i32, message = "qd,kd->qk"}> : () -> ()
    %cst_37 = arith.constant dense<0.000000e+00> : vector<8x8xf32>
    %64 = tpu.matmul %59, %61, %cst_37 {dimension_numbers = #tpu.dot_dimension_numbers<[1], [1], [0], [0], [0, 0, 1, 0], [], []>} : vector<8x16xbf16>, vector<8x16xbf16>, vector<8x8xf32> -> vector<8x8xf32>
    "tpu.trace_stop"() : () -> ()
    %cst_38 = arith.constant 2.500000e-01 : f32
    %65 = vector.broadcast %cst_38 : f32 to vector<8x8xf32>
    %66 = arith.mulf %64, %65 : vector<8x8xf32>
    %cst_39 = arith.constant -1.000000e+09 : f32
    %67 = vector.broadcast %cst_39 : f32 to vector<8x8xf32>
    %68 = arith.select %9, %67, %66 : vector<8x8xi1>, vector<8x8xf32>
    %cst_40 = arith.constant dense<0xFF800000> : vector<8xf32>
    %69 = vector.multi_reduction <maximumf>, %68, %cst_40 [1] : vector<8x8xf32> to vector<8xf32>
    %70 = vector.shape_cast %69 : vector<8xf32> to vector<8x1xf32>
    %71 = vector.broadcast %70 : vector<8x1xf32> to vector<8x8xf32>
    %72 = arith.subf %68, %71 : vector<8x8xf32>
    %73 = math.exp %72 : vector<8x8xf32>
    %cst_41 = arith.constant dense<0.000000e+00> : vector<8xf32>
    %74 = vector.multi_reduction <add>, %73, %cst_41 [1] : vector<8x8xf32> to vector<8xf32>
    %75 = vector.shape_cast %74 : vector<8xf32> to vector<8x1xf32>
    %76 = tpu.reciprocal %75 {approx = true} : vector<8x1xf32> -> vector<8x1xf32>
    %77 = vector.broadcast %76 : vector<8x1xf32> to vector<8x8xf32>
    %78 = arith.mulf %73, %77 : vector<8x8xf32>
    %79 = arith.truncf %78 : vector<8x8xf32> to vector<8x8xbf16>
    %cst_42 = arith.constant dense<0.000000e+00> : vector<8x16xf32>
    %80 = tpu.matmul %79, %63, %cst_42 {dimension_numbers = #tpu.dot_dimension_numbers<[1], [0], [0], [1], [0, 0, 1, 1], [], []>} : vector<8x8xbf16>, vector<8x16xbf16>, vector<8x16xf32> -> vector<8x16xf32>
    %81 = tpu.concatenate %57, %80 in 1 : vector<8x16xf32>, vector<8x16xf32> -> vector<8x32xf32>
    %82 = arith.truncf %81 : vector<8x32xf32> to vector<8x32xbf16>
    %c0_43 = arith.constant 0 : index
    %c0_44 = arith.constant 0 : index
    %c0_45 = arith.constant 0 : index
    %83 = vector.load %arg10[%c0_43, %c0_44, %c0_45] : memref<3x32x32xbf16, #tpu.memory_space<vmem>>, vector<1x32x32xbf16>
    %84 = vector.shape_cast %83 : vector<1x32x32xbf16> to vector<32x32xbf16>
    %cst_46 = arith.constant dense<0.000000e+00> : vector<8x32xf32>
    %85 = tpu.matmul %82, %84, %cst_46 {dimension_numbers = #tpu.dot_dimension_numbers<[1], [0], [0], [1], [0, 0, 1, 1], [], []>} : vector<8x32xbf16>, vector<32x32xbf16>, vector<8x32xf32> -> vector<8x32xf32>
    %c0_47 = arith.constant 0 : index
    %c0_48 = arith.constant 0 : index
    %c0_49 = arith.constant 0 : index
    %86 = vector.load %arg11[%c0_47, %c0_48, %c0_49] : memref<3x1x32xf32, #tpu.memory_space<vmem>>, vector<1x1x32xf32>
    %87 = vector.shape_cast %86 : vector<1x1x32xf32> to vector<1x32xf32>
    %88 = vector.broadcast %87 : vector<1x32xf32> to vector<8x32xf32>
    %89 = arith.addf %85, %88 : vector<8x32xf32>
    %90 = arith.addf %89, %3 : vector<8x32xf32>
    %c0_50 = arith.constant 0 : index
    %c0_51 = arith.constant 0 : index
    %c0_52 = arith.constant 0 : index
    %91 = vector.load %arg12[%c0_50, %c0_51, %c0_52] : memref<3x1x32xf32, #tpu.memory_space<vmem>>, vector<1x1x32xf32>
    %92 = vector.shape_cast %91 : vector<1x1x32xf32> to vector<1x32xf32>
    %c0_53 = arith.constant 0 : index
    %c0_54 = arith.constant 0 : index
    %c0_55 = arith.constant 0 : index
    %93 = vector.load %arg13[%c0_53, %c0_54, %c0_55] : memref<3x1x32xf32, #tpu.memory_space<vmem>>, vector<1x1x32xf32>
    %94 = vector.shape_cast %93 : vector<1x1x32xf32> to vector<1x32xf32>
    %cst_56 = arith.constant dense<0.000000e+00> : vector<8xf32>
    %95 = vector.multi_reduction <add>, %90, %cst_56 [1] : vector<8x32xf32> to vector<8xf32>
    %96 = vector.shape_cast %95 : vector<8xf32> to vector<8x1xf32>
    %cst_57 = arith.constant 3.200000e+01 : f32
    %97 = vector.broadcast %cst_57 : f32 to vector<8x1xf32>
    %98 = arith.divf %96, %97 : vector<8x1xf32>
    %99 = vector.broadcast %98 : vector<8x1xf32> to vector<8x32xf32>
    %100 = arith.subf %90, %99 : vector<8x32xf32>
    %101 = arith.mulf %100, %100 : vector<8x32xf32>
    %cst_58 = arith.constant dense<0.000000e+00> : vector<8xf32>
    %102 = vector.multi_reduction <add>, %101, %cst_58 [1] : vector<8x32xf32> to vector<8xf32>
    %103 = vector.shape_cast %102 : vector<8xf32> to vector<8x1xf32>
    %cst_59 = arith.constant 3.200000e+01 : f32
    %104 = vector.broadcast %cst_59 : f32 to vector<8x1xf32>
    %105 = arith.divf %103, %104 : vector<8x1xf32>
    %106 = vector.broadcast %98 : vector<8x1xf32> to vector<8x32xf32>
    %107 = arith.subf %90, %106 : vector<8x32xf32>
    %cst_60 = arith.constant 9.99999974E-6 : f32
    %108 = vector.broadcast %cst_60 : f32 to vector<8x1xf32>
    %109 = arith.addf %105, %108 : vector<8x1xf32>
    %110 = math.rsqrt %109 : vector<8x1xf32>
    %111 = vector.broadcast %110 : vector<8x1xf32> to vector<8x32xf32>
    %112 = arith.mulf %107, %111 : vector<8x32xf32>
    %113 = vector.broadcast %92 : vector<1x32xf32> to vector<8x32xf32>
    %114 = arith.mulf %112, %113 : vector<8x32xf32>
    %115 = vector.broadcast %94 : vector<1x32xf32> to vector<8x32xf32>
    %116 = arith.addf %114, %115 : vector<8x32xf32>
    %117 = arith.truncf %116 : vector<8x32xf32> to vector<8x32xbf16>
    %c0_61 = arith.constant 0 : index
    %c0_62 = arith.constant 0 : index
    %c0_63 = arith.constant 0 : index
    %118 = vector.load %arg14[%c0_61, %c0_62, %c0_63] : memref<3x32x64xbf16, #tpu.memory_space<vmem>>, vector<1x32x64xbf16>
    %119 = vector.shape_cast %118 : vector<1x32x64xbf16> to vector<32x64xbf16>
    %cst_64 = arith.constant dense<0.000000e+00> : vector<8x64xf32>
    %120 = tpu.matmul %117, %119, %cst_64 {dimension_numbers = #tpu.dot_dimension_numbers<[1], [0], [0], [1], [0, 0, 1, 1], [], []>} : vector<8x32xbf16>, vector<32x64xbf16>, vector<8x64xf32> -> vector<8x64xf32>
    %c0_65 = arith.constant 0 : index
    %c0_66 = arith.constant 0 : index
    %c0_67 = arith.constant 0 : index
    %121 = vector.load %arg15[%c0_65, %c0_66, %c0_67] : memref<3x1x64xf32, #tpu.memory_space<vmem>>, vector<1x1x64xf32>
    %122 = vector.shape_cast %121 : vector<1x1x64xf32> to vector<1x64xf32>
    %123 = vector.broadcast %122 : vector<1x64xf32> to vector<8x64xf32>
    %124 = arith.addf %120, %123 : vector<8x64xf32>
    %cst_68 = arith.constant 0.000000e+00 : f32
    %125 = vector.broadcast %cst_68 : f32 to vector<8x64xf32>
    %126 = arith.maximumf %124, %125 : vector<8x64xf32>
    %127 = arith.truncf %126 : vector<8x64xf32> to vector<8x64xbf16>
    %c0_69 = arith.constant 0 : index
    %c0_70 = arith.constant 0 : index
    %c0_71 = arith.constant 0 : index
    %128 = vector.load %arg16[%c0_69, %c0_70, %c0_71] : memref<3x64x32xbf16, #tpu.memory_space<vmem>>, vector<1x64x32xbf16>
    %129 = vector.shape_cast %128 : vector<1x64x32xbf16> to vector<64x32xbf16>
    %cst_72 = arith.constant dense<0.000000e+00> : vector<8x32xf32>
    %130 = tpu.matmul %127, %129, %cst_72 {dimension_numbers = #tpu.dot_dimension_numbers<[1], [0], [0], [1], [0, 0, 1, 1], [], []>} : vector<8x64xbf16>, vector<64x32xbf16>, vector<8x32xf32> -> vector<8x32xf32>
    %c0_73 = arith.constant 0 : index
    %c0_74 = arith.constant 0 : index
    %c0_75 = arith.constant 0 : index
    %131 = vector.load %arg17[%c0_73, %c0_74, %c0_75] : memref<3x1x32xf32, #tpu.memory_space<vmem>>, vector<1x1x32xf32>
    %132 = vector.shape_cast %131 : vector<1x1x32xf32> to vector<1x32xf32>
    %133 = vector.broadcast %132 : vector<1x32xf32> to vector<8x32xf32>
    %134 = arith.addf %130, %133 : vector<8x32xf32>
    %135 = arith.addf %134, %116 : vector<8x32xf32>
    %c0_76 = arith.constant 0 : index
    %c0_77 = arith.constant 0 : index
    %c0_78 = arith.constant 0 : index
    %136 = vector.load %arg18[%c0_76, %c0_77, %c0_78] : memref<3x1x32xf32, #tpu.memory_space<vmem>>, vector<1x1x32xf32>
    %137 = vector.shape_cast %136 : vector<1x1x32xf32> to vector<1x32xf32>
    %c0_79 = arith.constant 0 : index
    %c0_80 = arith.constant 0 : index
    %c0_81 = arith.constant 0 : index
    %138 = vector.load %arg19[%c0_79, %c0_80, %c0_81] : memref<3x1x32xf32, #tpu.memory_space<vmem>>, vector<1x1x32xf32>
    %139 = vector.shape_cast %138 : vector<1x1x32xf32> to vector<1x32xf32>
    %cst_82 = arith.constant dense<0.000000e+00> : vector<8xf32>
    %140 = vector.multi_reduction <add>, %135, %cst_82 [1] : vector<8x32xf32> to vector<8xf32>
    %141 = vector.shape_cast %140 : vector<8xf32> to vector<8x1xf32>
    %cst_83 = arith.constant 3.200000e+01 : f32
    %142 = vector.broadcast %cst_83 : f32 to vector<8x1xf32>
    %143 = arith.divf %141, %142 : vector<8x1xf32>
    %144 = vector.broadcast %143 : vector<8x1xf32> to vector<8x32xf32>
    %145 = arith.subf %135, %144 : vector<8x32xf32>
    %146 = arith.mulf %145, %145 : vector<8x32xf32>
    %cst_84 = arith.constant dense<0.000000e+00> : vector<8xf32>
    %147 = vector.multi_reduction <add>, %146, %cst_84 [1] : vector<8x32xf32> to vector<8xf32>
    %148 = vector.shape_cast %147 : vector<8xf32> to vector<8x1xf32>
    %cst_85 = arith.constant 3.200000e+01 : f32
    %149 = vector.broadcast %cst_85 : f32 to vector<8x1xf32>
    %150 = arith.divf %148, %149 : vector<8x1xf32>
    %151 = vector.broadcast %143 : vector<8x1xf32> to vector<8x32xf32>
    %152 = arith.subf %135, %151 : vector<8x32xf32>
    %cst_86 = arith.constant 9.99999974E-6 : f32
    %153 = vector.broadcast %cst_86 : f32 to vector<8x1xf32>
    %154 = arith.addf %150, %153 : vector<8x1xf32>
    %155 = math.rsqrt %154 : vector<8x1xf32>
    %156 = vector.broadcast %155 : vector<8x1xf32> to vector<8x32xf32>
    %157 = arith.mulf %152, %156 : vector<8x32xf32>
    %158 = vector.broadcast %137 : vector<1x32xf32> to vector<8x32xf32>
    %159 = arith.mulf %157, %158 : vector<8x32xf32>
    %160 = vector.broadcast %139 : vector<1x32xf32> to vector<8x32xf32>
    %161 = arith.addf %159, %160 : vector<8x32xf32>
    %162 = arith.addf %12, %161 : vector<8x32xf32>
    %163 = arith.addf %10, %55 : vector<8x8xf32>
    %164 = arith.addf %11, %78 : vector<8x8xf32>
    %165 = arith.truncf %161 : vector<8x32xf32> to vector<8x32xbf16>
    %c1 = arith.constant 1 : index
    %c0_87 = arith.constant 0 : index
    %c0_88 = arith.constant 0 : index
    %166 = vector.load %arg4[%c1, %c0_87, %c0_88] : memref<3x32x32xbf16, #tpu.memory_space<vmem>>, vector<1x32x32xbf16>
    %167 = vector.shape_cast %166 : vector<1x32x32xbf16> to vector<32x32xbf16>
    %cst_89 = arith.constant dense<0.000000e+00> : vector<8x32xf32>
    %168 = tpu.matmul %165, %167, %cst_89 {dimension_numbers = #tpu.dot_dimension_numbers<[1], [0], [0], [1], [0, 0, 1, 1], [], []>} : vector<8x32xbf16>, vector<32x32xbf16>, vector<8x32xf32> -> vector<8x32xf32>
    %c1_90 = arith.constant 1 : index
    %c0_91 = arith.constant 0 : index
    %c0_92 = arith.constant 0 : index
    %169 = vector.load %arg5[%c1_90, %c0_91, %c0_92] : memref<3x1x32xf32, #tpu.memory_space<vmem>>, vector<1x1x32xf32>
    %170 = vector.shape_cast %169 : vector<1x1x32xf32> to vector<1x32xf32>
    %171 = vector.broadcast %170 : vector<1x32xf32> to vector<8x32xf32>
    %172 = arith.addf %168, %171 : vector<8x32xf32>
    %c1_93 = arith.constant 1 : index
    %c0_94 = arith.constant 0 : index
    %c0_95 = arith.constant 0 : index
    %173 = vector.load %arg6[%c1_93, %c0_94, %c0_95] : memref<3x32x32xbf16, #tpu.memory_space<vmem>>, vector<1x32x32xbf16>
    %174 = vector.shape_cast %173 : vector<1x32x32xbf16> to vector<32x32xbf16>
    %cst_96 = arith.constant dense<0.000000e+00> : vector<8x32xf32>
    %175 = tpu.matmul %165, %174, %cst_96 {dimension_numbers = #tpu.dot_dimension_numbers<[1], [0], [0], [1], [0, 0, 1, 1], [], []>} : vector<8x32xbf16>, vector<32x32xbf16>, vector<8x32xf32> -> vector<8x32xf32>
    %c1_97 = arith.constant 1 : index
    %c0_98 = arith.constant 0 : index
    %c0_99 = arith.constant 0 : index
    %176 = vector.load %arg7[%c1_97, %c0_98, %c0_99] : memref<3x1x32xf32, #tpu.memory_space<vmem>>, vector<1x1x32xf32>
    %177 = vector.shape_cast %176 : vector<1x1x32xf32> to vector<1x32xf32>
    %178 = vector.broadcast %177 : vector<1x32xf32> to vector<8x32xf32>
    %179 = arith.addf %175, %178 : vector<8x32xf32>
    %c1_100 = arith.constant 1 : index
    %c0_101 = arith.constant 0 : index
    %c0_102 = arith.constant 0 : index
    %180 = vector.load %arg8[%c1_100, %c0_101, %c0_102] : memref<3x32x32xbf16, #tpu.memory_space<vmem>>, vector<1x32x32xbf16>
    %181 = vector.shape_cast %180 : vector<1x32x32xbf16> to vector<32x32xbf16>
    %cst_103 = arith.constant dense<0.000000e+00> : vector<8x32xf32>
    %182 = tpu.matmul %165, %181, %cst_103 {dimension_numbers = #tpu.dot_dimension_numbers<[1], [0], [0], [1], [0, 0, 1, 1], [], []>} : vector<8x32xbf16>, vector<32x32xbf16>, vector<8x32xf32> -> vector<8x32xf32>
    %c1_104 = arith.constant 1 : index
    %c0_105 = arith.constant 0 : index
    %c0_106 = arith.constant 0 : index
    %183 = vector.load %arg9[%c1_104, %c0_105, %c0_106] : memref<3x1x32xf32, #tpu.memory_space<vmem>>, vector<1x1x32xf32>
    %184 = vector.shape_cast %183 : vector<1x1x32xf32> to vector<1x32xf32>
    %185 = vector.broadcast %184 : vector<1x32xf32> to vector<8x32xf32>
    %186 = arith.addf %182, %185 : vector<8x32xf32>
    %187 = vector.extract_strided_slice %172 {offsets = [0, 0], sizes = [8, 16], strides = [1, 1]} : vector<8x32xf32> to vector<8x16xf32>
    %188 = arith.truncf %187 : vector<8x16xf32> to vector<8x16xbf16>
    %189 = vector.extract_strided_slice %179 {offsets = [0, 0], sizes = [8, 16], strides = [1, 1]} : vector<8x32xf32> to vector<8x16xf32>
    %190 = arith.truncf %189 : vector<8x16xf32> to vector<8x16xbf16>
    %191 = vector.extract_strided_slice %186 {offsets = [0, 0], sizes = [8, 16], strides = [1, 1]} : vector<8x32xf32> to vector<8x16xf32>
    %192 = arith.truncf %191 : vector<8x16xf32> to vector<8x16xbf16>
    "tpu.trace_start"() <{level = 10 : i32, message = "qd,kd->qk"}> : () -> ()
    %cst_107 = arith.constant dense<0.000000e+00> : vector<8x8xf32>
    %193 = tpu.matmul %188, %190, %cst_107 {dimension_numbers = #tpu.dot_dimension_numbers<[1], [1], [0], [0], [0, 0, 1, 0], [], []>} : vector<8x16xbf16>, vector<8x16xbf16>, vector<8x8xf32> -> vector<8x8xf32>
    "tpu.trace_stop"() : () -> ()
    %cst_108 = arith.constant 2.500000e-01 : f32
    %194 = vector.broadcast %cst_108 : f32 to vector<8x8xf32>
    %195 = arith.mulf %193, %194 : vector<8x8xf32>
    %cst_109 = arith.constant -1.000000e+09 : f32
    %196 = vector.broadcast %cst_109 : f32 to vector<8x8xf32>
    %197 = arith.select %9, %196, %195 : vector<8x8xi1>, vector<8x8xf32>
    %cst_110 = arith.constant dense<0xFF800000> : vector<8xf32>
    %198 = vector.multi_reduction <maximumf>, %197, %cst_110 [1] : vector<8x8xf32> to vector<8xf32>
    %199 = vector.shape_cast %198 : vector<8xf32> to vector<8x1xf32>
    %200 = vector.broadcast %199 : vector<8x1xf32> to vector<8x8xf32>
    %201 = arith.subf %197, %200 : vector<8x8xf32>
    %202 = math.exp %201 : vector<8x8xf32>
    %cst_111 = arith.constant dense<0.000000e+00> : vector<8xf32>
    %203 = vector.multi_reduction <add>, %202, %cst_111 [1] : vector<8x8xf32> to vector<8xf32>
    %204 = vector.shape_cast %203 : vector<8xf32> to vector<8x1xf32>
    %205 = tpu.reciprocal %204 {approx = true} : vector<8x1xf32> -> vector<8x1xf32>
    %206 = vector.broadcast %205 : vector<8x1xf32> to vector<8x8xf32>
    %207 = arith.mulf %202, %206 : vector<8x8xf32>
    %208 = arith.truncf %207 : vector<8x8xf32> to vector<8x8xbf16>
    %cst_112 = arith.constant dense<0.000000e+00> : vector<8x16xf32>
    %209 = tpu.matmul %208, %192, %cst_112 {dimension_numbers = #tpu.dot_dimension_numbers<[1], [0], [0], [1], [0, 0, 1, 1], [], []>} : vector<8x8xbf16>, vector<8x16xbf16>, vector<8x16xf32> -> vector<8x16xf32>
    %210 = vector.extract_strided_slice %172 {offsets = [0, 16], sizes = [8, 16], strides = [1, 1]} : vector<8x32xf32> to vector<8x16xf32>
    %211 = arith.truncf %210 : vector<8x16xf32> to vector<8x16xbf16>
    %212 = vector.extract_strided_slice %179 {offsets = [0, 16], sizes = [8, 16], strides = [1, 1]} : vector<8x32xf32> to vector<8x16xf32>
    %213 = arith.truncf %212 : vector<8x16xf32> to vector<8x16xbf16>
    %214 = vector.extract_strided_slice %186 {offsets = [0, 16], sizes = [8, 16], strides = [1, 1]} : vector<8x32xf32> to vector<8x16xf32>
    %215 = arith.truncf %214 : vector<8x16xf32> to vector<8x16xbf16>
    "tpu.trace_start"() <{level = 10 : i32, message = "qd,kd->qk"}> : () -> ()
    %cst_113 = arith.constant dense<0.000000e+00> : vector<8x8xf32>
    %216 = tpu.matmul %211, %213, %cst_113 {dimension_numbers = #tpu.dot_dimension_numbers<[1], [1], [0], [0], [0, 0, 1, 0], [], []>} : vector<8x16xbf16>, vector<8x16xbf16>, vector<8x8xf32> -> vector<8x8xf32>
    "tpu.trace_stop"() : () -> ()
    %cst_114 = arith.constant 2.500000e-01 : f32
    %217 = vector.broadcast %cst_114 : f32 to vector<8x8xf32>
    %218 = arith.mulf %216, %217 : vector<8x8xf32>
    %cst_115 = arith.constant -1.000000e+09 : f32
    %219 = vector.broadcast %cst_115 : f32 to vector<8x8xf32>
    %220 = arith.select %9, %219, %218 : vector<8x8xi1>, vector<8x8xf32>
    %cst_116 = arith.constant dense<0xFF800000> : vector<8xf32>
    %221 = vector.multi_reduction <maximumf>, %220, %cst_116 [1] : vector<8x8xf32> to vector<8xf32>
    %222 = vector.shape_cast %221 : vector<8xf32> to vector<8x1xf32>
    %223 = vector.broadcast %222 : vector<8x1xf32> to vector<8x8xf32>
    %224 = arith.subf %220, %223 : vector<8x8xf32>
    %225 = math.exp %224 : vector<8x8xf32>
    %cst_117 = arith.constant dense<0.000000e+00> : vector<8xf32>
    %226 = vector.multi_reduction <add>, %225, %cst_117 [1] : vector<8x8xf32> to vector<8xf32>
    %227 = vector.shape_cast %226 : vector<8xf32> to vector<8x1xf32>
    %228 = tpu.reciprocal %227 {approx = true} : vector<8x1xf32> -> vector<8x1xf32>
    %229 = vector.broadcast %228 : vector<8x1xf32> to vector<8x8xf32>
    %230 = arith.mulf %225, %229 : vector<8x8xf32>
    %231 = arith.truncf %230 : vector<8x8xf32> to vector<8x8xbf16>
    %cst_118 = arith.constant dense<0.000000e+00> : vector<8x16xf32>
    %232 = tpu.matmul %231, %215, %cst_118 {dimension_numbers = #tpu.dot_dimension_numbers<[1], [0], [0], [1], [0, 0, 1, 1], [], []>} : vector<8x8xbf16>, vector<8x16xbf16>, vector<8x16xf32> -> vector<8x16xf32>
    %233 = tpu.concatenate %209, %232 in 1 : vector<8x16xf32>, vector<8x16xf32> -> vector<8x32xf32>
    %234 = arith.truncf %233 : vector<8x32xf32> to vector<8x32xbf16>
    %c1_119 = arith.constant 1 : index
    %c0_120 = arith.constant 0 : index
    %c0_121 = arith.constant 0 : index
    %235 = vector.load %arg10[%c1_119, %c0_120, %c0_121] : memref<3x32x32xbf16, #tpu.memory_space<vmem>>, vector<1x32x32xbf16>
    %236 = vector.shape_cast %235 : vector<1x32x32xbf16> to vector<32x32xbf16>
    %cst_122 = arith.constant dense<0.000000e+00> : vector<8x32xf32>
    %237 = tpu.matmul %234, %236, %cst_122 {dimension_numbers = #tpu.dot_dimension_numbers<[1], [0], [0], [1], [0, 0, 1, 1], [], []>} : vector<8x32xbf16>, vector<32x32xbf16>, vector<8x32xf32> -> vector<8x32xf32>
    %c1_123 = arith.constant 1 : index
    %c0_124 = arith.constant 0 : index
    %c0_125 = arith.constant 0 : index
    %238 = vector.load %arg11[%c1_123, %c0_124, %c0_125] : memref<3x1x32xf32, #tpu.memory_space<vmem>>, vector<1x1x32xf32>
    %239 = vector.shape_cast %238 : vector<1x1x32xf32> to vector<1x32xf32>
    %240 = vector.broadcast %239 : vector<1x32xf32> to vector<8x32xf32>
    %241 = arith.addf %237, %240 : vector<8x32xf32>
    %242 = arith.addf %241, %161 : vector<8x32xf32>
    %c1_126 = arith.constant 1 : index
    %c0_127 = arith.constant 0 : index
    %c0_128 = arith.constant 0 : index
    %243 = vector.load %arg12[%c1_126, %c0_127, %c0_128] : memref<3x1x32xf32, #tpu.memory_space<vmem>>, vector<1x1x32xf32>
    %244 = vector.shape_cast %243 : vector<1x1x32xf32> to vector<1x32xf32>
    %c1_129 = arith.constant 1 : index
    %c0_130 = arith.constant 0 : index
    %c0_131 = arith.constant 0 : index
    %245 = vector.load %arg13[%c1_129, %c0_130, %c0_131] : memref<3x1x32xf32, #tpu.memory_space<vmem>>, vector<1x1x32xf32>
    %246 = vector.shape_cast %245 : vector<1x1x32xf32> to vector<1x32xf32>
    %cst_132 = arith.constant dense<0.000000e+00> : vector<8xf32>
    %247 = vector.multi_reduction <add>, %242, %cst_132 [1] : vector<8x32xf32> to vector<8xf32>
    %248 = vector.shape_cast %247 : vector<8xf32> to vector<8x1xf32>
    %cst_133 = arith.constant 3.200000e+01 : f32
    %249 = vector.broadcast %cst_133 : f32 to vector<8x1xf32>
    %250 = arith.divf %248, %249 : vector<8x1xf32>
    %251 = vector.broadcast %250 : vector<8x1xf32> to vector<8x32xf32>
    %252 = arith.subf %242, %251 : vector<8x32xf32>
    %253 = arith.mulf %252, %252 : vector<8x32xf32>
    %cst_134 = arith.constant dense<0.000000e+00> : vector<8xf32>
    %254 = vector.multi_reduction <add>, %253, %cst_134 [1] : vector<8x32xf32> to vector<8xf32>
    %255 = vector.shape_cast %254 : vector<8xf32> to vector<8x1xf32>
    %cst_135 = arith.constant 3.200000e+01 : f32
    %256 = vector.broadcast %cst_135 : f32 to vector<8x1xf32>
    %257 = arith.divf %255, %256 : vector<8x1xf32>
    %258 = vector.broadcast %250 : vector<8x1xf32> to vector<8x32xf32>
    %259 = arith.subf %242, %258 : vector<8x32xf32>
    %cst_136 = arith.constant 9.99999974E-6 : f32
    %260 = vector.broadcast %cst_136 : f32 to vector<8x1xf32>
    %261 = arith.addf %257, %260 : vector<8x1xf32>
    %262 = math.rsqrt %261 : vector<8x1xf32>
    %263 = vector.broadcast %262 : vector<8x1xf32> to vector<8x32xf32>
    %264 = arith.mulf %259, %263 : vector<8x32xf32>
    %265 = vector.broadcast %244 : vector<1x32xf32> to vector<8x32xf32>
    %266 = arith.mulf %264, %265 : vector<8x32xf32>
    %267 = vector.broadcast %246 : vector<1x32xf32> to vector<8x32xf32>
    %268 = arith.addf %266, %267 : vector<8x32xf32>
    %269 = arith.truncf %268 : vector<8x32xf32> to vector<8x32xbf16>
    %c1_137 = arith.constant 1 : index
    %c0_138 = arith.constant 0 : index
    %c0_139 = arith.constant 0 : index
    %270 = vector.load %arg14[%c1_137, %c0_138, %c0_139] : memref<3x32x64xbf16, #tpu.memory_space<vmem>>, vector<1x32x64xbf16>
    %271 = vector.shape_cast %270 : vector<1x32x64xbf16> to vector<32x64xbf16>
    %cst_140 = arith.constant dense<0.000000e+00> : vector<8x64xf32>
    %272 = tpu.matmul %269, %271, %cst_140 {dimension_numbers = #tpu.dot_dimension_numbers<[1], [0], [0], [1], [0, 0, 1, 1], [], []>} : vector<8x32xbf16>, vector<32x64xbf16>, vector<8x64xf32> -> vector<8x64xf32>
    %c1_141 = arith.constant 1 : index
    %c0_142 = arith.constant 0 : index
    %c0_143 = arith.constant 0 : index
    %273 = vector.load %arg15[%c1_141, %c0_142, %c0_143] : memref<3x1x64xf32, #tpu.memory_space<vmem>>, vector<1x1x64xf32>
    %274 = vector.shape_cast %273 : vector<1x1x64xf32> to vector<1x64xf32>
    %275 = vector.broadcast %274 : vector<1x64xf32> to vector<8x64xf32>
    %276 = arith.addf %272, %275 : vector<8x64xf32>
    %cst_144 = arith.constant 0.000000e+00 : f32
    %277 = vector.broadcast %cst_144 : f32 to vector<8x64xf32>
    %278 = arith.maximumf %276, %277 : vector<8x64xf32>
    %279 = arith.truncf %278 : vector<8x64xf32> to vector<8x64xbf16>
    %c1_145 = arith.constant 1 : index
    %c0_146 = arith.constant 0 : index
    %c0_147 = arith.constant 0 : index
    %280 = vector.load %arg16[%c1_145, %c0_146, %c0_147] : memref<3x64x32xbf16, #tpu.memory_space<vmem>>, vector<1x64x32xbf16>
    %281 = vector.shape_cast %280 : vector<1x64x32xbf16> to vector<64x32xbf16>
    %cst_148 = arith.constant dense<0.000000e+00> : vector<8x32xf32>
    %282 = tpu.matmul %279, %281, %cst_148 {dimension_numbers = #tpu.dot_dimension_numbers<[1], [0], [0], [1], [0, 0, 1, 1], [], []>} : vector<8x64xbf16>, vector<64x32xbf16>, vector<8x32xf32> -> vector<8x32xf32>
    %c1_149 = arith.constant 1 : index
    %c0_150 = arith.constant 0 : index
    %c0_151 = arith.constant 0 : index
    %283 = vector.load %arg17[%c1_149, %c0_150, %c0_151] : memref<3x1x32xf32, #tpu.memory_space<vmem>>, vector<1x1x32xf32>
    %284 = vector.shape_cast %283 : vector<1x1x32xf32> to vector<1x32xf32>
    %285 = vector.broadcast %284 : vector<1x32xf32> to vector<8x32xf32>
    %286 = arith.addf %282, %285 : vector<8x32xf32>
    %287 = arith.addf %286, %268 : vector<8x32xf32>
    %c1_152 = arith.constant 1 : index
    %c0_153 = arith.constant 0 : index
    %c0_154 = arith.constant 0 : index
    %288 = vector.load %arg18[%c1_152, %c0_153, %c0_154] : memref<3x1x32xf32, #tpu.memory_space<vmem>>, vector<1x1x32xf32>
    %289 = vector.shape_cast %288 : vector<1x1x32xf32> to vector<1x32xf32>
    %c1_155 = arith.constant 1 : index
    %c0_156 = arith.constant 0 : index
    %c0_157 = arith.constant 0 : index
    %290 = vector.load %arg19[%c1_155, %c0_156, %c0_157] : memref<3x1x32xf32, #tpu.memory_space<vmem>>, vector<1x1x32xf32>
    %291 = vector.shape_cast %290 : vector<1x1x32xf32> to vector<1x32xf32>
    %cst_158 = arith.constant dense<0.000000e+00> : vector<8xf32>
    %292 = vector.multi_reduction <add>, %287, %cst_158 [1] : vector<8x32xf32> to vector<8xf32>
    %293 = vector.shape_cast %292 : vector<8xf32> to vector<8x1xf32>
    %cst_159 = arith.constant 3.200000e+01 : f32
    %294 = vector.broadcast %cst_159 : f32 to vector<8x1xf32>
    %295 = arith.divf %293, %294 : vector<8x1xf32>
    %296 = vector.broadcast %295 : vector<8x1xf32> to vector<8x32xf32>
    %297 = arith.subf %287, %296 : vector<8x32xf32>
    %298 = arith.mulf %297, %297 : vector<8x32xf32>
    %cst_160 = arith.constant dense<0.000000e+00> : vector<8xf32>
    %299 = vector.multi_reduction <add>, %298, %cst_160 [1] : vector<8x32xf32> to vector<8xf32>
    %300 = vector.shape_cast %299 : vector<8xf32> to vector<8x1xf32>
    %cst_161 = arith.constant 3.200000e+01 : f32
    %301 = vector.broadcast %cst_161 : f32 to vector<8x1xf32>
    %302 = arith.divf %300, %301 : vector<8x1xf32>
    %303 = vector.broadcast %295 : vector<8x1xf32> to vector<8x32xf32>
    %304 = arith.subf %287, %303 : vector<8x32xf32>
    %cst_162 = arith.constant 9.99999974E-6 : f32
    %305 = vector.broadcast %cst_162 : f32 to vector<8x1xf32>
    %306 = arith.addf %302, %305 : vector<8x1xf32>
    %307 = math.rsqrt %306 : vector<8x1xf32>
    %308 = vector.broadcast %307 : vector<8x1xf32> to vector<8x32xf32>
    %309 = arith.mulf %304, %308 : vector<8x32xf32>
    %310 = vector.broadcast %289 : vector<1x32xf32> to vector<8x32xf32>
    %311 = arith.mulf %309, %310 : vector<8x32xf32>
    %312 = vector.broadcast %291 : vector<1x32xf32> to vector<8x32xf32>
    %313 = arith.addf %311, %312 : vector<8x32xf32>
    %314 = arith.addf %162, %313 : vector<8x32xf32>
    %315 = arith.addf %163, %207 : vector<8x8xf32>
    %316 = arith.addf %164, %230 : vector<8x8xf32>
    %317 = arith.truncf %313 : vector<8x32xf32> to vector<8x32xbf16>
    %c2 = arith.constant 2 : index
    %c0_163 = arith.constant 0 : index
    %c0_164 = arith.constant 0 : index
    %318 = vector.load %arg4[%c2, %c0_163, %c0_164] : memref<3x32x32xbf16, #tpu.memory_space<vmem>>, vector<1x32x32xbf16>
    %319 = vector.shape_cast %318 : vector<1x32x32xbf16> to vector<32x32xbf16>
    %cst_165 = arith.constant dense<0.000000e+00> : vector<8x32xf32>
    %320 = tpu.matmul %317, %319, %cst_165 {dimension_numbers = #tpu.dot_dimension_numbers<[1], [0], [0], [1], [0, 0, 1, 1], [], []>} : vector<8x32xbf16>, vector<32x32xbf16>, vector<8x32xf32> -> vector<8x32xf32>
    %c2_166 = arith.constant 2 : index
    %c0_167 = arith.constant 0 : index
    %c0_168 = arith.constant 0 : index
    %321 = vector.load %arg5[%c2_166, %c0_167, %c0_168] : memref<3x1x32xf32, #tpu.memory_space<vmem>>, vector<1x1x32xf32>
    %322 = vector.shape_cast %321 : vector<1x1x32xf32> to vector<1x32xf32>
    %323 = vector.broadcast %322 : vector<1x32xf32> to vector<8x32xf32>
    %324 = arith.addf %320, %323 : vector<8x32xf32>
    %c2_169 = arith.constant 2 : index
    %c0_170 = arith.constant 0 : index
    %c0_171 = arith.constant 0 : index
    %325 = vector.load %arg6[%c2_169, %c0_170, %c0_171] : memref<3x32x32xbf16, #tpu.memory_space<vmem>>, vector<1x32x32xbf16>
    %326 = vector.shape_cast %325 : vector<1x32x32xbf16> to vector<32x32xbf16>
    %cst_172 = arith.constant dense<0.000000e+00> : vector<8x32xf32>
    %327 = tpu.matmul %317, %326, %cst_172 {dimension_numbers = #tpu.dot_dimension_numbers<[1], [0], [0], [1], [0, 0, 1, 1], [], []>} : vector<8x32xbf16>, vector<32x32xbf16>, vector<8x32xf32> -> vector<8x32xf32>
    %c2_173 = arith.constant 2 : index
    %c0_174 = arith.constant 0 : index
    %c0_175 = arith.constant 0 : index
    %328 = vector.load %arg7[%c2_173, %c0_174, %c0_175] : memref<3x1x32xf32, #tpu.memory_space<vmem>>, vector<1x1x32xf32>
    %329 = vector.shape_cast %328 : vector<1x1x32xf32> to vector<1x32xf32>
    %330 = vector.broadcast %329 : vector<1x32xf32> to vector<8x32xf32>
    %331 = arith.addf %327, %330 : vector<8x32xf32>
    %c2_176 = arith.constant 2 : index
    %c0_177 = arith.constant 0 : index
    %c0_178 = arith.constant 0 : index
    %332 = vector.load %arg8[%c2_176, %c0_177, %c0_178] : memref<3x32x32xbf16, #tpu.memory_space<vmem>>, vector<1x32x32xbf16>
    %333 = vector.shape_cast %332 : vector<1x32x32xbf16> to vector<32x32xbf16>
    %cst_179 = arith.constant dense<0.000000e+00> : vector<8x32xf32>
    %334 = tpu.matmul %317, %333, %cst_179 {dimension_numbers = #tpu.dot_dimension_numbers<[1], [0], [0], [1], [0, 0, 1, 1], [], []>} : vector<8x32xbf16>, vector<32x32xbf16>, vector<8x32xf32> -> vector<8x32xf32>
    %c2_180 = arith.constant 2 : index
    %c0_181 = arith.constant 0 : index
    %c0_182 = arith.constant 0 : index
    %335 = vector.load %arg9[%c2_180, %c0_181, %c0_182] : memref<3x1x32xf32, #tpu.memory_space<vmem>>, vector<1x1x32xf32>
    %336 = vector.shape_cast %335 : vector<1x1x32xf32> to vector<1x32xf32>
    %337 = vector.broadcast %336 : vector<1x32xf32> to vector<8x32xf32>
    %338 = arith.addf %334, %337 : vector<8x32xf32>
    %339 = vector.extract_strided_slice %324 {offsets = [0, 0], sizes = [8, 16], strides = [1, 1]} : vector<8x32xf32> to vector<8x16xf32>
    %340 = arith.truncf %339 : vector<8x16xf32> to vector<8x16xbf16>
    %341 = vector.extract_strided_slice %331 {offsets = [0, 0], sizes = [8, 16], strides = [1, 1]} : vector<8x32xf32> to vector<8x16xf32>
    %342 = arith.truncf %341 : vector<8x16xf32> to vector<8x16xbf16>
    %343 = vector.extract_strided_slice %338 {offsets = [0, 0], sizes = [8, 16], strides = [1, 1]} : vector<8x32xf32> to vector<8x16xf32>
    %344 = arith.truncf %343 : vector<8x16xf32> to vector<8x16xbf16>
    "tpu.trace_start"() <{level = 10 : i32, message = "qd,kd->qk"}> : () -> ()
    %cst_183 = arith.constant dense<0.000000e+00> : vector<8x8xf32>
    %345 = tpu.matmul %340, %342, %cst_183 {dimension_numbers = #tpu.dot_dimension_numbers<[1], [1], [0], [0], [0, 0, 1, 0], [], []>} : vector<8x16xbf16>, vector<8x16xbf16>, vector<8x8xf32> -> vector<8x8xf32>
    "tpu.trace_stop"() : () -> ()
    %cst_184 = arith.constant 2.500000e-01 : f32
    %346 = vector.broadcast %cst_184 : f32 to vector<8x8xf32>
    %347 = arith.mulf %345, %346 : vector<8x8xf32>
    %cst_185 = arith.constant -1.000000e+09 : f32
    %348 = vector.broadcast %cst_185 : f32 to vector<8x8xf32>
    %349 = arith.select %9, %348, %347 : vector<8x8xi1>, vector<8x8xf32>
    %cst_186 = arith.constant dense<0xFF800000> : vector<8xf32>
    %350 = vector.multi_reduction <maximumf>, %349, %cst_186 [1] : vector<8x8xf32> to vector<8xf32>
    %351 = vector.shape_cast %350 : vector<8xf32> to vector<8x1xf32>
    %352 = vector.broadcast %351 : vector<8x1xf32> to vector<8x8xf32>
    %353 = arith.subf %349, %352 : vector<8x8xf32>
    %354 = math.exp %353 : vector<8x8xf32>
    %cst_187 = arith.constant dense<0.000000e+00> : vector<8xf32>
    %355 = vector.multi_reduction <add>, %354, %cst_187 [1] : vector<8x8xf32> to vector<8xf32>
    %356 = vector.shape_cast %355 : vector<8xf32> to vector<8x1xf32>
    %357 = tpu.reciprocal %356 {approx = true} : vector<8x1xf32> -> vector<8x1xf32>
    %358 = vector.broadcast %357 : vector<8x1xf32> to vector<8x8xf32>
    %359 = arith.mulf %354, %358 : vector<8x8xf32>
    %360 = arith.truncf %359 : vector<8x8xf32> to vector<8x8xbf16>
    %cst_188 = arith.constant dense<0.000000e+00> : vector<8x16xf32>
    %361 = tpu.matmul %360, %344, %cst_188 {dimension_numbers = #tpu.dot_dimension_numbers<[1], [0], [0], [1], [0, 0, 1, 1], [], []>} : vector<8x8xbf16>, vector<8x16xbf16>, vector<8x16xf32> -> vector<8x16xf32>
    %362 = vector.extract_strided_slice %324 {offsets = [0, 16], sizes = [8, 16], strides = [1, 1]} : vector<8x32xf32> to vector<8x16xf32>
    %363 = arith.truncf %362 : vector<8x16xf32> to vector<8x16xbf16>
    %364 = vector.extract_strided_slice %331 {offsets = [0, 16], sizes = [8, 16], strides = [1, 1]} : vector<8x32xf32> to vector<8x16xf32>
    %365 = arith.truncf %364 : vector<8x16xf32> to vector<8x16xbf16>
    %366 = vector.extract_strided_slice %338 {offsets = [0, 16], sizes = [8, 16], strides = [1, 1]} : vector<8x32xf32> to vector<8x16xf32>
    %367 = arith.truncf %366 : vector<8x16xf32> to vector<8x16xbf16>
    "tpu.trace_start"() <{level = 10 : i32, message = "qd,kd->qk"}> : () -> ()
    %cst_189 = arith.constant dense<0.000000e+00> : vector<8x8xf32>
    %368 = tpu.matmul %363, %365, %cst_189 {dimension_numbers = #tpu.dot_dimension_numbers<[1], [1], [0], [0], [0, 0, 1, 0], [], []>} : vector<8x16xbf16>, vector<8x16xbf16>, vector<8x8xf32> -> vector<8x8xf32>
    "tpu.trace_stop"() : () -> ()
    %cst_190 = arith.constant 2.500000e-01 : f32
    %369 = vector.broadcast %cst_190 : f32 to vector<8x8xf32>
    %370 = arith.mulf %368, %369 : vector<8x8xf32>
    %cst_191 = arith.constant -1.000000e+09 : f32
    %371 = vector.broadcast %cst_191 : f32 to vector<8x8xf32>
    %372 = arith.select %9, %371, %370 : vector<8x8xi1>, vector<8x8xf32>
    %cst_192 = arith.constant dense<0xFF800000> : vector<8xf32>
    %373 = vector.multi_reduction <maximumf>, %372, %cst_192 [1] : vector<8x8xf32> to vector<8xf32>
    %374 = vector.shape_cast %373 : vector<8xf32> to vector<8x1xf32>
    %375 = vector.broadcast %374 : vector<8x1xf32> to vector<8x8xf32>
    %376 = arith.subf %372, %375 : vector<8x8xf32>
    %377 = math.exp %376 : vector<8x8xf32>
    %cst_193 = arith.constant dense<0.000000e+00> : vector<8xf32>
    %378 = vector.multi_reduction <add>, %377, %cst_193 [1] : vector<8x8xf32> to vector<8xf32>
    %379 = vector.shape_cast %378 : vector<8xf32> to vector<8x1xf32>
    %380 = tpu.reciprocal %379 {approx = true} : vector<8x1xf32> -> vector<8x1xf32>
    %381 = vector.broadcast %380 : vector<8x1xf32> to vector<8x8xf32>
    %382 = arith.mulf %377, %381 : vector<8x8xf32>
    %383 = arith.truncf %382 : vector<8x8xf32> to vector<8x8xbf16>
    %cst_194 = arith.constant dense<0.000000e+00> : vector<8x16xf32>
    %384 = tpu.matmul %383, %367, %cst_194 {dimension_numbers = #tpu.dot_dimension_numbers<[1], [0], [0], [1], [0, 0, 1, 1], [], []>} : vector<8x8xbf16>, vector<8x16xbf16>, vector<8x16xf32> -> vector<8x16xf32>
    %385 = tpu.concatenate %361, %384 in 1 : vector<8x16xf32>, vector<8x16xf32> -> vector<8x32xf32>
    %386 = arith.truncf %385 : vector<8x32xf32> to vector<8x32xbf16>
    %c2_195 = arith.constant 2 : index
    %c0_196 = arith.constant 0 : index
    %c0_197 = arith.constant 0 : index
    %387 = vector.load %arg10[%c2_195, %c0_196, %c0_197] : memref<3x32x32xbf16, #tpu.memory_space<vmem>>, vector<1x32x32xbf16>
    %388 = vector.shape_cast %387 : vector<1x32x32xbf16> to vector<32x32xbf16>
    %cst_198 = arith.constant dense<0.000000e+00> : vector<8x32xf32>
    %389 = tpu.matmul %386, %388, %cst_198 {dimension_numbers = #tpu.dot_dimension_numbers<[1], [0], [0], [1], [0, 0, 1, 1], [], []>} : vector<8x32xbf16>, vector<32x32xbf16>, vector<8x32xf32> -> vector<8x32xf32>
    %c2_199 = arith.constant 2 : index
    %c0_200 = arith.constant 0 : index
    %c0_201 = arith.constant 0 : index
    %390 = vector.load %arg11[%c2_199, %c0_200, %c0_201] : memref<3x1x32xf32, #tpu.memory_space<vmem>>, vector<1x1x32xf32>
    %391 = vector.shape_cast %390 : vector<1x1x32xf32> to vector<1x32xf32>
    %392 = vector.broadcast %391 : vector<1x32xf32> to vector<8x32xf32>
    %393 = arith.addf %389, %392 : vector<8x32xf32>
    %394 = arith.addf %393, %313 : vector<8x32xf32>
    %c2_202 = arith.constant 2 : index
    %c0_203 = arith.constant 0 : index
    %c0_204 = arith.constant 0 : index
    %395 = vector.load %arg12[%c2_202, %c0_203, %c0_204] : memref<3x1x32xf32, #tpu.memory_space<vmem>>, vector<1x1x32xf32>
    %396 = vector.shape_cast %395 : vector<1x1x32xf32> to vector<1x32xf32>
    %c2_205 = arith.constant 2 : index
    %c0_206 = arith.constant 0 : index
    %c0_207 = arith.constant 0 : index
    %397 = vector.load %arg13[%c2_205, %c0_206, %c0_207] : memref<3x1x32xf32, #tpu.memory_space<vmem>>, vector<1x1x32xf32>
    %398 = vector.shape_cast %397 : vector<1x1x32xf32> to vector<1x32xf32>
    %cst_208 = arith.constant dense<0.000000e+00> : vector<8xf32>
    %399 = vector.multi_reduction <add>, %394, %cst_208 [1] : vector<8x32xf32> to vector<8xf32>
    %400 = vector.shape_cast %399 : vector<8xf32> to vector<8x1xf32>
    %cst_209 = arith.constant 3.200000e+01 : f32
    %401 = vector.broadcast %cst_209 : f32 to vector<8x1xf32>
    %402 = arith.divf %400, %401 : vector<8x1xf32>
    %403 = vector.broadcast %402 : vector<8x1xf32> to vector<8x32xf32>
    %404 = arith.subf %394, %403 : vector<8x32xf32>
    %405 = arith.mulf %404, %404 : vector<8x32xf32>
    %cst_210 = arith.constant dense<0.000000e+00> : vector<8xf32>
    %406 = vector.multi_reduction <add>, %405, %cst_210 [1] : vector<8x32xf32> to vector<8xf32>
    %407 = vector.shape_cast %406 : vector<8xf32> to vector<8x1xf32>
    %cst_211 = arith.constant 3.200000e+01 : f32
    %408 = vector.broadcast %cst_211 : f32 to vector<8x1xf32>
    %409 = arith.divf %407, %408 : vector<8x1xf32>
    %410 = vector.broadcast %402 : vector<8x1xf32> to vector<8x32xf32>
    %411 = arith.subf %394, %410 : vector<8x32xf32>
    %cst_212 = arith.constant 9.99999974E-6 : f32
    %412 = vector.broadcast %cst_212 : f32 to vector<8x1xf32>
    %413 = arith.addf %409, %412 : vector<8x1xf32>
    %414 = math.rsqrt %413 : vector<8x1xf32>
    %415 = vector.broadcast %414 : vector<8x1xf32> to vector<8x32xf32>
    %416 = arith.mulf %411, %415 : vector<8x32xf32>
    %417 = vector.broadcast %396 : vector<1x32xf32> to vector<8x32xf32>
    %418 = arith.mulf %416, %417 : vector<8x32xf32>
    %419 = vector.broadcast %398 : vector<1x32xf32> to vector<8x32xf32>
    %420 = arith.addf %418, %419 : vector<8x32xf32>
    %421 = arith.truncf %420 : vector<8x32xf32> to vector<8x32xbf16>
    %c2_213 = arith.constant 2 : index
    %c0_214 = arith.constant 0 : index
    %c0_215 = arith.constant 0 : index
    %422 = vector.load %arg14[%c2_213, %c0_214, %c0_215] : memref<3x32x64xbf16, #tpu.memory_space<vmem>>, vector<1x32x64xbf16>
    %423 = vector.shape_cast %422 : vector<1x32x64xbf16> to vector<32x64xbf16>
    %cst_216 = arith.constant dense<0.000000e+00> : vector<8x64xf32>
    %424 = tpu.matmul %421, %423, %cst_216 {dimension_numbers = #tpu.dot_dimension_numbers<[1], [0], [0], [1], [0, 0, 1, 1], [], []>} : vector<8x32xbf16>, vector<32x64xbf16>, vector<8x64xf32> -> vector<8x64xf32>
    %c2_217 = arith.constant 2 : index
    %c0_218 = arith.constant 0 : index
    %c0_219 = arith.constant 0 : index
    %425 = vector.load %arg15[%c2_217, %c0_218, %c0_219] : memref<3x1x64xf32, #tpu.memory_space<vmem>>, vector<1x1x64xf32>
    %426 = vector.shape_cast %425 : vector<1x1x64xf32> to vector<1x64xf32>
    %427 = vector.broadcast %426 : vector<1x64xf32> to vector<8x64xf32>
    %428 = arith.addf %424, %427 : vector<8x64xf32>
    %cst_220 = arith.constant 0.000000e+00 : f32
    %429 = vector.broadcast %cst_220 : f32 to vector<8x64xf32>
    %430 = arith.maximumf %428, %429 : vector<8x64xf32>
    %431 = arith.truncf %430 : vector<8x64xf32> to vector<8x64xbf16>
    %c2_221 = arith.constant 2 : index
    %c0_222 = arith.constant 0 : index
    %c0_223 = arith.constant 0 : index
    %432 = vector.load %arg16[%c2_221, %c0_222, %c0_223] : memref<3x64x32xbf16, #tpu.memory_space<vmem>>, vector<1x64x32xbf16>
    %433 = vector.shape_cast %432 : vector<1x64x32xbf16> to vector<64x32xbf16>
    %cst_224 = arith.constant dense<0.000000e+00> : vector<8x32xf32>
    %434 = tpu.matmul %431, %433, %cst_224 {dimension_numbers = #tpu.dot_dimension_numbers<[1], [0], [0], [1], [0, 0, 1, 1], [], []>} : vector<8x64xbf16>, vector<64x32xbf16>, vector<8x32xf32> -> vector<8x32xf32>
    %c2_225 = arith.constant 2 : index
    %c0_226 = arith.constant 0 : index
    %c0_227 = arith.constant 0 : index
    %435 = vector.load %arg17[%c2_225, %c0_226, %c0_227] : memref<3x1x32xf32, #tpu.memory_space<vmem>>, vector<1x1x32xf32>
    %436 = vector.shape_cast %435 : vector<1x1x32xf32> to vector<1x32xf32>
    %437 = vector.broadcast %436 : vector<1x32xf32> to vector<8x32xf32>
    %438 = arith.addf %434, %437 : vector<8x32xf32>
    %439 = arith.addf %438, %420 : vector<8x32xf32>
    %c2_228 = arith.constant 2 : index
    %c0_229 = arith.constant 0 : index
    %c0_230 = arith.constant 0 : index
    %440 = vector.load %arg18[%c2_228, %c0_229, %c0_230] : memref<3x1x32xf32, #tpu.memory_space<vmem>>, vector<1x1x32xf32>
    %441 = vector.shape_cast %440 : vector<1x1x32xf32> to vector<1x32xf32>
    %c2_231 = arith.constant 2 : index
    %c0_232 = arith.constant 0 : index
    %c0_233 = arith.constant 0 : index
    %442 = vector.load %arg19[%c2_231, %c0_232, %c0_233] : memref<3x1x32xf32, #tpu.memory_space<vmem>>, vector<1x1x32xf32>
    %443 = vector.shape_cast %442 : vector<1x1x32xf32> to vector<1x32xf32>
    %cst_234 = arith.constant dense<0.000000e+00> : vector<8xf32>
    %444 = vector.multi_reduction <add>, %439, %cst_234 [1] : vector<8x32xf32> to vector<8xf32>
    %445 = vector.shape_cast %444 : vector<8xf32> to vector<8x1xf32>
    %cst_235 = arith.constant 3.200000e+01 : f32
    %446 = vector.broadcast %cst_235 : f32 to vector<8x1xf32>
    %447 = arith.divf %445, %446 : vector<8x1xf32>
    %448 = vector.broadcast %447 : vector<8x1xf32> to vector<8x32xf32>
    %449 = arith.subf %439, %448 : vector<8x32xf32>
    %450 = arith.mulf %449, %449 : vector<8x32xf32>
    %cst_236 = arith.constant dense<0.000000e+00> : vector<8xf32>
    %451 = vector.multi_reduction <add>, %450, %cst_236 [1] : vector<8x32xf32> to vector<8xf32>
    %452 = vector.shape_cast %451 : vector<8xf32> to vector<8x1xf32>
    %cst_237 = arith.constant 3.200000e+01 : f32
    %453 = vector.broadcast %cst_237 : f32 to vector<8x1xf32>
    %454 = arith.divf %452, %453 : vector<8x1xf32>
    %455 = vector.broadcast %447 : vector<8x1xf32> to vector<8x32xf32>
    %456 = arith.subf %439, %455 : vector<8x32xf32>
    %cst_238 = arith.constant 9.99999974E-6 : f32
    %457 = vector.broadcast %cst_238 : f32 to vector<8x1xf32>
    %458 = arith.addf %454, %457 : vector<8x1xf32>
    %459 = math.rsqrt %458 : vector<8x1xf32>
    %460 = vector.broadcast %459 : vector<8x1xf32> to vector<8x32xf32>
    %461 = arith.mulf %456, %460 : vector<8x32xf32>
    %462 = vector.broadcast %441 : vector<1x32xf32> to vector<8x32xf32>
    %463 = arith.mulf %461, %462 : vector<8x32xf32>
    %464 = vector.broadcast %443 : vector<1x32xf32> to vector<8x32xf32>
    %465 = arith.addf %463, %464 : vector<8x32xf32>
    %466 = arith.addf %314, %465 : vector<8x32xf32>
    %467 = arith.addf %315, %359 : vector<8x8xf32>
    %468 = arith.addf %316, %382 : vector<8x8xf32>
    %c0_239 = arith.constant 0 : index
    %c0_240 = arith.constant 0 : index
    %c0_241 = arith.constant 0 : index
    %469 = vector.load %arg20[%c0_239, %c0_240, %c0_241] : memref<1x8x32xf32, #tpu.memory_space<vmem>>, vector<1x8x32xf32>
    %470 = vector.shape_cast %469 : vector<1x8x32xf32> to vector<8x32xf32>
    %471 = vector.shape_cast %465 : vector<8x32xf32> to vector<1x8x32xf32>
    tpu.vector_store %arg20[%c0_239, %c0_240, %c0_241], %471 {strides = array<i32>} : memref<1x8x32xf32, #tpu.memory_space<vmem>>, vector<1x8x32xf32>,
    %cst_242 = arith.constant 0.333333343 : f32
    %472 = vector.broadcast %cst_242 : f32 to vector<8x32xf32>
    %473 = arith.mulf %466, %472 : vector<8x32xf32>
    %c0_243 = arith.constant 0 : index
    %c0_244 = arith.constant 0 : index
    %c0_245 = arith.constant 0 : index
    %474 = vector.load %arg22[%c0_243, %c0_244, %c0_245] : memref<1x8x32xf32, #tpu.memory_space<vmem>>, vector<1x8x32xf32>
    %475 = vector.shape_cast %474 : vector<1x8x32xf32> to vector<8x32xf32>
    %476 = vector.shape_cast %473 : vector<8x32xf32> to vector<1x8x32xf32>
    tpu.vector_store %arg22[%c0_243, %c0_244, %c0_245], %476 {strides = array<i32>} : memref<1x8x32xf32, #tpu.memory_space<vmem>>, vector<1x8x32xf32>,
    %cst_246 = arith.constant 0.333333343 : f32
    %477 = vector.broadcast %cst_246 : f32 to vector<8x8xf32>
    %478 = arith.mulf %467, %477 : vector<8x8xf32>
    %c0_247 = arith.constant 0 : index
    %c0_248 = arith.constant 0 : index
    %c0_249 = arith.constant 0 : index
    %c0_250 = arith.constant 0 : index
    %479 = vector.load %arg21[%c0_247, %c0_248, %c0_249, %c0_250] : memref<1x2x8x8xf32, #tpu.memory_space<vmem>>, vector<1x1x8x8xf32>
    %480 = vector.shape_cast %479 : vector<1x1x8x8xf32> to vector<8x8xf32>
    %481 = vector.shape_cast %478 : vector<8x8xf32> to vector<1x1x8x8xf32>
    tpu.vector_store %arg21[%c0_247, %c0_248, %c0_249, %c0_250], %481 {strides = array<i32>} : memref<1x2x8x8xf32, #tpu.memory_space<vmem>>, vector<1x1x8x8xf32>,
    %cst_251 = arith.constant 0.333333343 : f32
    %482 = vector.broadcast %cst_251 : f32 to vector<8x8xf32>
    %483 = arith.mulf %468, %482 : vector<8x8xf32>
    %c0_252 = arith.constant 0 : index
    %c1_253 = arith.constant 1 : index
    %c0_254 = arith.constant 0 : index
    %c0_255 = arith.constant 0 : index
    %484 = vector.load %arg21[%c0_252, %c1_253, %c0_254, %c0_255] : memref<1x2x8x8xf32, #tpu.memory_space<vmem>>, vector<1x1x8x8xf32>
    %485 = vector.shape_cast %484 : vector<1x1x8x8xf32> to vector<8x8xf32>
    %486 = vector.shape_cast %483 : vector<8x8xf32> to vector<1x1x8x8xf32>
    tpu.vector_store %arg21[%c0_252, %c1_253, %c0_254, %c0_255], %486 {strides = array<i32>} : memref<1x2x8x8xf32, #tpu.memory_space<vmem>>, vector<1x1x8x8xf32>,
    return
  }
  func.func @transform_0(%arg0: i32) -> (i32, i32, i32) {
    %c0_i32 = arith.constant 0 : i32
    %c0_i32_0 = arith.constant 0 : i32
    %c0_i32_1 = arith.constant 0 : i32
    return %arg0, %c0_i32, %c0_i32_0 : i32, i32, i32
  }
  func.func @transform_1(%arg0: i32) -> (i32, i32) {
    %c0_i32 = arith.constant 0 : i32
    %c0_i32_0 = arith.constant 0 : i32
    %c0_i32_1 = arith.constant 0 : i32
    return %c0_i32, %c0_i32_0 : i32, i32
  }
  func.func @transform_2(%arg0: i32) -> (i32, i32, i32) {
    %c0_i32 = arith.constant 0 : i32
    %c0_i32_0 = arith.constant 0 : i32
    %c0_i32_1 = arith.constant 0 : i32
    return %arg0, %c0_i32, %c0_i32_0 : i32, i32, i32
  }
  func.func @transform_3(%arg0: i32) -> (i32, i32, i32) {
    %c0_i32 = arith.constant 0 : i32
    %c0_i32_0 = arith.constant 0 : i32
    %c0_i32_1 = arith.constant 0 : i32
    %c0_i32_2 = arith.constant 0 : i32
    return %c0_i32, %c0_i32_0, %c0_i32_1 : i32, i32, i32
  }
  func.func @transform_4(%arg0: i32) -> (i32, i32, i32) {
    %c0_i32 = arith.constant 0 : i32
    %c0_i32_0 = arith.constant 0 : i32
    %c0_i32_1 = arith.constant 0 : i32
    %c0_i32_2 = arith.constant 0 : i32
    return %c0_i32, %c0_i32_0, %c0_i32_1 : i32, i32, i32
  }
  func.func @transform_5(%arg0: i32) -> (i32, i32, i32) {
    %c0_i32 = arith.constant 0 : i32
    %c0_i32_0 = arith.constant 0 : i32
    %c0_i32_1 = arith.constant 0 : i32
    %c0_i32_2 = arith.constant 0 : i32
    return %c0_i32, %c0_i32_0, %c0_i32_1 : i32, i32, i32
  }
  func.func @transform_6(%arg0: i32) -> (i32, i32, i32) {
    %c0_i32 = arith.constant 0 : i32
    %c0_i32_0 = arith.constant 0 : i32
    %c0_i32_1 = arith.constant 0 : i32
    %c0_i32_2 = arith.constant 0 : i32
    return %c0_i32, %c0_i32_0, %c0_i32_1 : i32, i32, i32
  }
  func.func @transform_7(%arg0: i32) -> (i32, i32, i32) {
    %c0_i32 = arith.constant 0 : i32
    %c0_i32_0 = arith.constant 0 : i32
    %c0_i32_1 = arith.constant 0 : i32
    %c0_i32_2 = arith.constant 0 : i32
    return %c0_i32, %c0_i32_0, %c0_i32_1 : i32, i32, i32
  }
  func.func @transform_8(%arg0: i32) -> (i32, i32, i32) {
    %c0_i32 = arith.constant 0 : i32
    %c0_i32_0 = arith.constant 0 : i32
    %c0_i32_1 = arith.constant 0 : i32
    %c0_i32_2 = arith.constant 0 : i32
    return %c0_i32, %c0_i32_0, %c0_i32_1 : i32, i32, i32
  }
  func.func @transform_9(%arg0: i32) -> (i32, i32, i32) {
    %c0_i32 = arith.constant 0 : i32
    %c0_i32_0 = arith.constant 0 : i32
    %c0_i32_1 = arith.constant 0 : i32
    %c0_i32_2 = arith.constant 0 : i32
    return %c0_i32, %c0_i32_0, %c0_i32_1 : i32, i32, i32
  }
  func.func @transform_10(%arg0: i32) -> (i32, i32, i32) {
    %c0_i32 = arith.constant 0 : i32
    %c0_i32_0 = arith.constant 0 : i32
    %c0_i32_1 = arith.constant 0 : i32
    %c0_i32_2 = arith.constant 0 : i32
    return %c0_i32, %c0_i32_0, %c0_i32_1 : i32, i32, i32
  }
  func.func @transform_11(%arg0: i32) -> (i32, i32, i32) {
    %c0_i32 = arith.constant 0 : i32
    %c0_i32_0 = arith.constant 0 : i32
    %c0_i32_1 = arith.constant 0 : i32
    %c0_i32_2 = arith.constant 0 : i32
    return %c0_i32, %c0_i32_0, %c0_i32_1 : i32, i32, i32
  }
  func.func @transform_12(%arg0: i32) -> (i32, i32, i32) {
    %c0_i32 = arith.constant 0 : i32
    %c0_i32_0 = arith.constant 0 : i32
    %c0_i32_1 = arith.constant 0 : i32
    %c0_i32_2 = arith.constant 0 : i32
    return %c0_i32, %c0_i32_0, %c0_i32_1 : i32, i32, i32
  }
  func.func @transform_13(%arg0: i32) -> (i32, i32, i32) {
    %c0_i32 = arith.constant 0 : i32
    %c0_i32_0 = arith.constant 0 : i32
    %c0_i32_1 = arith.constant 0 : i32
    %c0_i32_2 = arith.constant 0 : i32
    return %c0_i32, %c0_i32_0, %c0_i32_1 : i32, i32, i32
  }
  func.func @transform_14(%arg0: i32) -> (i32, i32, i32) {
    %c0_i32 = arith.constant 0 : i32
    %c0_i32_0 = arith.constant 0 : i32
    %c0_i32_1 = arith.constant 0 : i32
    %c0_i32_2 = arith.constant 0 : i32
    return %c0_i32, %c0_i32_0, %c0_i32_1 : i32, i32, i32
  }
  func.func @transform_15(%arg0: i32) -> (i32, i32, i32) {
    %c0_i32 = arith.constant 0 : i32
    %c0_i32_0 = arith.constant 0 : i32
    %c0_i32_1 = arith.constant 0 : i32
    %c0_i32_2 = arith.constant 0 : i32
    return %c0_i32, %c0_i32_0, %c0_i32_1 : i32, i32, i32
  }
  func.func @transform_16(%arg0: i32) -> (i32, i32, i32) {
    %c0_i32 = arith.constant 0 : i32
    %c0_i32_0 = arith.constant 0 : i32
    %c0_i32_1 = arith.constant 0 : i32
    %c0_i32_2 = arith.constant 0 : i32
    return %c0_i32, %c0_i32_0, %c0_i32_1 : i32, i32, i32
  }
  func.func @transform_17(%arg0: i32) -> (i32, i32, i32) {
    %c0_i32 = arith.constant 0 : i32
    %c0_i32_0 = arith.constant 0 : i32
    %c0_i32_1 = arith.constant 0 : i32
    %c0_i32_2 = arith.constant 0 : i32
    return %c0_i32, %c0_i32_0, %c0_i32_1 : i32, i32, i32
  }
  func.func @transform_18(%arg0: i32) -> (i32, i32, i32) {
    %c0_i32 = arith.constant 0 : i32
    %c0_i32_0 = arith.constant 0 : i32
    %c0_i32_1 = arith.constant 0 : i32
    %c0_i32_2 = arith.constant 0 : i32
    return %c0_i32, %c0_i32_0, %c0_i32_1 : i32, i32, i32
  }
  func.func @transform_19(%arg0: i32) -> (i32, i32, i32) {
    %c0_i32 = arith.constant 0 : i32
    %c0_i32_0 = arith.constant 0 : i32
    %c0_i32_1 = arith.constant 0 : i32
    return %arg0, %c0_i32, %c0_i32_0 : i32, i32, i32
  }
  func.func @transform_20(%arg0: i32) -> (i32, i32, i32, i32) {
    %c0_i32 = arith.constant 0 : i32
    %c0_i32_0 = arith.constant 0 : i32
    %c0_i32_1 = arith.constant 0 : i32
    %c0_i32_2 = arith.constant 0 : i32
    return %arg0, %c0_i32, %c0_i32_0, %c0_i32_1 : i32, i32, i32, i32
  }
  func.func @transform_21(%arg0: i32) -> (i32, i32, i32) {
    %c0_i32 = arith.constant 0 : i32
    %c0_i32_0 = arith.constant 0 : i32
    %c0_i32_1 = arith.constant 0 : i32
    return %arg0, %c0_i32, %c0_i32_0 : i32, i32, i32
  }
}

</mosaic_0001>

<bundles_post_ra>
// kernel: tpu_custom_call.1
= control target key start
LH: loop header
LB: loop body
LE: loop exit
PB: predicated region body
PF: predicated region fallthrough
CT: control target
= control target key end

     0   :  { %s4183_s0 = inlined_call_operand.hbm [shape: f32[2,8,32], index: 0, kind: input, shape index: {}]   ;;  %s4184_s1 = inlined_call_operand.hbm [shape: f32[8,32], index: 1, kind: input, shape index: {}]   ;;  %s4185_s2 = inlined_call_operand.hbm [shape: f32[2,1,8], index: 2, kind: input, shape index: {}]   ;;  %s4186_s3 = inlined_call_operand.vmem [shape: bf16[3,32,32], index: 3, kind: input, shape index: {}]   ;;  %s4187_s4 = inlined_call_operand.vmem [shape: f32[3,1,32], index: 4, kind: input, shape index: {}]   ;;  %s4188_s5 = inlined_call_operand.vmem [shape: bf16[3,32,32], index: 5, kind: input, shape index: {}]   ;;  %s4189_s6 = inlined_call_operand.hbm [shape: f32[3,1,32], index: 6, kind: input, shape index: {}]   ;;  %s4190_s7 = inlined_call_operand.vmem [shape: bf16[3,32,32], index: 7, kind: input, shape index: {}]   ;;  %s4191_s8 = inlined_call_operand.vmem [shape: f32[3,1,32], index: 8, kind: input, shape index: {}]   ;;  %s4192_s9 = inlined_call_operand.hbm [shape: bf16[3,32,32], index: 9, kind: input, shape index: {}]   ;;  %s4193_s10 = inlined_call_operand.vmem [shape: f32[3,1,32], index: 10, kind: input, shape index: {}]   ;;  %s4194_s11 = inlined_call_operand.hbm [shape: f32[3,1,32], index: 11, kind: input, shape index: {}]   ;;  %s4195_s12 = inlined_call_operand.hbm [shape: f32[3,1,32], index: 12, kind: input, shape index: {}]   ;;  %s4196_s13 = inlined_call_operand.hbm [shape: bf16[3,32,64], index: 13, kind: input, shape index: {}]   ;;  %s4197_s14 = inlined_call_operand.vmem [shape: f32[3,1,64], index: 14, kind: input, shape index: {}]   ;;  %s4198_s15 = inlined_call_operand.vmem [shape: bf16[3,64,32], index: 15, kind: input, shape index: {}]   ;;  %s4199_s16 = inlined_call_operand.vmem [shape: f32[3,1,32], index: 16, kind: input, shape index: {}]   ;;  %s4200_s17 = inlined_call_operand.hbm [shape: f32[3,1,32], index: 17, kind: input, shape index: {}]   ;;  %s4201_s18 = inlined_call_operand.hbm [shape: f32[3,1,32], index: 18, kind: input, shape index: {}]   ;;  %s4202_s19 = inlined_call_operand.hbm [shape: f32[2,8,32], index: 19, kind: output, shape index: {0}]   ;;  %s4203_s20 = inlined_call_operand.hbm [shape: f32[2,2,8,8], index: 20, kind: output, shape index: {1}]   ;;  %s4204_s21 = inlined_call_operand.hbm [shape: f32[2,8,32], index: 21, kind: output, shape index: {2}]  }
   0x1   :  { %4232 = sst [smem:[#allocation36_spill]] %s4183_s0 }
   0x2   :  { %4233 = sst [smem:[#allocation37_spill]] %s4184_s1 }
   0x3   :  { %4234 = sst [smem:[#allocation38_spill]] %s4185_s2 }
   0x4   :  { %4235 = sst [smem:[#allocation39_spill]] %s4186_s3 }
   0x5   :  { %4236 = sst [smem:[#allocation40_spill]] %s4187_s4 }
   0x6   :  { %4237 = sst [smem:[#allocation41_spill]] %s4188_s5 }
   0x7   :  { %4238 = sst [smem:[#allocation42_spill]] %s4189_s6 }
   0x8   :  { %4239 = sst [smem:[#allocation43_spill]] %s4190_s7 }
   0x9   :  { %4240 = sst [smem:[#allocation44_spill]] %s4191_s8 }
   0xa   :  { %4241 = sst [smem:[#allocation45_spill]] %s4192_s9 }
   0xb   :  { %4242 = sst [smem:[#allocation46_spill]] %s4194_s11 }
   0xc   :  { %4243 = sst [smem:[#allocation47_spill]] %s4195_s12 }
   0xd   :  { %4244 = sst [smem:[#allocation48_spill]] %s4196_s13 }
   0xe   :  { %4245 = sst [smem:[#allocation49_spill]] %s4197_s14 }
   0xf   :  { %4246 = sst [smem:[#allocation50_spill]] %s4199_s16 }
  0x10   :  { %4247 = sst [smem:[#allocation51_spill]] %s4200_s17 }
  0x11   :  { %4248 = sst [smem:[#allocation52_spill]] %s4201_s18 }
  0x12   :  { %4249 = sst [smem:[#allocation53_spill]] %s4202_s19 }
  0x13   :  { %4250 = sst [smem:[#allocation54_spill]] %s4203_s20 }
  0x14   :  { %4251 = sst [smem:[#allocation55_spill]] %s4204_s21 }
  0x15   :  { %27 = vsyncpa [#allocation3], 0 }
  0x16   :  { %29 = vsyncpa [#allocation3 + $0x1], 0 }
  0x17   :  { %30 = vsyncpa [#allocation6], 0 }
  0x18   :  { %31 = vsyncpa [#allocation10], 0 }
  0x19   :  { %32 = vsyncpa [#allocation13], 0 }
  0x1a   :  { %33 = vsyncpa [#allocation16], 0 }
  0x1b   :  { %34 = vsyncpa [#allocation4], 0 }
  0x1c   :  { %36 = vsyncpa [#allocation4 + $0x1], 0 }
  0x1d   :  { %37 = vsyncpa [#allocation20], 0 }
  0x1e   :  { %39 = vsyncpa [#allocation20 + $0x1], 0  ;;  %s3587_s2 = smov 0   ;;  %s3589_s25 = smov 0  }
  0x1f   :  { %s3591_s26 = smov 0   ;;  %s3593_s27 = smov 0  }
  0x20 LB: > { %4252 = sst [smem:[#allocation31_spill]] %s3445_s2  ;;  %s3611_s4 = sadd.s32 4294967295, %s3457_s27   ;;  %s3457_s27 = sphi %s3593_s27, %s4306_s27   ;;  %s3453_s26 = sphi %s3591_s26, %s4310_s26   ;;  %s3449_s25 = sphi %s3589_s25, %s4309_s25   ;;  %s3445_s2 = sphi %s3587_s2, %s4308_s2  }
  0x21   : > { %s4253_s29 = sld [smem:[#allocation37_spill]]  ;;  %p2461_p0 = scmp.ge.s32.totalorder %s3457_s27, 1 }
  0x22   : > { %p4228_p1 = scmp.eq.s32.totalorder %s3611_s4, 0  ;;  %p537_p2 = scmp.lt.s32.totalorder %s3457_s27, 3 }
  0x23   : > { %s3459_s5 = smov [#allocation5]   ;;  %s4255_s9 = sld [smem:[#allocation45_spill]] }
  0x24   : > { %p3616_p3 = pnand %p2461_p0, %p537_p2  ;;  %s551_s22 = sshll.u32 %s3459_s5, 4  ;;  %s552_s22 = int_to_ptr.vmem [resolvable:$true] %s551_s22 }
  0x25   : > { %s3460_s28 = smov [#allocation9]   ;;  %s4213_s5 = smov 64  }
  0x26   : > { %p2829_p5 = pneg %p3616_p3  ;;  %s4214_s21 = smov 4  }
  0x27   : > { %s549_s0 = sshll.u32 %s4253_s29, 4  ;;  %s591_s29 = sshll.u32 %s3460_s28, 4  ;;  %s550_s0 = int_to_ptr.hbm [resolvable:$true] %s549_s0  ;;  %s592_s29 = int_to_ptr.vmem [resolvable:$true] %s591_s29 }
  0x28   : > { %p3628_p6 = pnand %p2829_p5, %p4228_p1  ;;  %s4257_s12 = sld [smem:[#allocation47_spill]] }
  0x29   : > { %s589_s24 = sshll.u32 %s4255_s9, 4  ;;  %s3463_s28 = smov [#allocation12]   ;;  %s590_s24 = int_to_ptr.hbm [resolvable:$true] %s589_s24 }
  0x2a   : > { %2832 = dma.hbm_to_vmem [thread:$0]  (!%p3628_p6), %s550_s0, 128, %s552_s22, [#allocation6]  }
  0x2b   : > { %2838 = dma.hbm_to_vmem [thread:$0]  (!%p3628_p6), %s590_s24, 768, %s592_s29, [#allocation10], %s4213_s5, %s4213_s5, %s4214_s21  }
  0x2c   : > { %s622_s19 = sshll.u32 %s3463_s28, 4  ;;  %s4258_s17 = sld [smem:[#allocation51_spill]]  ;;  %s623_s19 = int_to_ptr.vmem [resolvable:$true] %s622_s19 }
  0x2d   : > { %s4215_s24 = smov 16   ;;  %s4217_s29 = smov 1  }
  0x2e   : > { %s620_s9 = sshll.u32 %s4257_s12, 4  ;;  %s3466_s23 = smov [#allocation15]   ;;  %s621_s9 = int_to_ptr.hbm [resolvable:$true] %s620_s9 }
  0x2f   : > { %2844 = dma.hbm_to_vmem [thread:$0]  (!%p3628_p6), %s621_s9, 48, %s623_s19, [#allocation13], %s4215_s24, %s4215_s24, %s4217_s29  }
  0x30   : > { %s659_s1 = sshll.u32 %s3466_s23, 4  ;;  %s4221_s28 = sadd.s32 4294967294, %s3457_s27   ;;  %s660_s1 = int_to_ptr.vmem [resolvable:$true] %s659_s1 }
  0x31   : > { %s3657_s0 = sadd.s32 1, %s3457_s27   ;;  %s52_s19 = sadd.s32 1, %s3453_s26 }
  0x32   : > { %s657_s20 = sshll.u32 %s4258_s17, 4  ;;  %4259 = sst [smem:[#allocation32_spill]] %s3657_s0  ;;  %s658_s20 = int_to_ptr.hbm [resolvable:$true] %s657_s20 }
  0x33   : > { %2850 = dma.hbm_to_vmem [thread:$0]  (!%p3628_p6), %s658_s20, 48, %s660_s1, [#allocation16], %s4215_s24, %s4215_s24, %s4217_s29  }
  0x34   : > { %s49_s9 = ssub.s32 %s3457_s27, %s3657_s0  ;;  %p59_p8 = scmp.ne.s32.totalorder %s3453_s26, %s3449_s25 }
  0x35   : > { %p50_p7 = scmp.eq.s32.totalorder %s49_s9, 0  ;;  %p60_p9 = scmp.eq.s32.totalorder %s3457_s27, 0 }
  0x36   : > { %p65_p10 = scmp.ne.s32.totalorder %s3449_s25, %s3445_s2  ;;  %p472_p13 = scmp.eq.s32.totalorder %s3611_s4, 1 }
  0x37   : > { %s3668_s22 = scalar_select %p50_p7, %s3453_s26, %s52_s19  }
  0x38   : > { %p3670_p11 = por %p60_p9, %p59_p8  ;;  %p3676_p12 = por %p4228_p1, %p65_p10 }
  0x39   : > { %4260 = sst [smem:[#allocation33_spill]] %s3668_s22  ;;  %p478_p0 = scmp.eq.s32.totalorder %s4221_s28, 1 }
  0x3a   : > { %p2879_p2 = scmp.lt.s32.totalorder %s3457_s27, 2  ;;  %s687_s1 = sand.u32 1, %s3457_s27  }
  0x3b   : > { %p3685_p5 = por %p472_p13, %p59_p8  ;;  %p3689_p7 = por %p478_p0, %p65_p10 }
  0x3c   : > { %s4227_s5 = sand.u32 1, %s3453_s26   ;;  %s2472_s24 = sshll.u32 %s3457_s27, 3 }
  0x3d   : > { %s4263_s9 = scalar_select %p3685_p5, 1, 0 }
  0x3e   : > { %s4265_s19 = scalar_select %p3689_p7, 1, 0 }
  0x3f   : > { %4264 = sst [smem:[#allocation34_spill]] %s4263_s9  ;;  %s2471_s21 = sshll.u32 %s4227_s5, 3 }
  0x40   : > { %4266 = sst [smem:[#allocation35_spill]] %s4265_s19  ;;  %s691_s28 = scalar_lea.vmem [#allocation2], %s2471_s21 }
  0x41   : > { %s4267_s17 = sld [smem:[#allocation36_spill]]  ;;  %s699_s2 = sshll.u32 %s691_s28, 4  ;;  %s700_s2 = int_to_ptr.vmem [resolvable:$true] %s699_s2 }
  0x42   : > { %p3704_p8 = pnand %p2879_p2, %p3670_p11  ;;  %s4269_s6 = sld [smem:[#allocation42_spill]] }
  0x43   : > { %s3467_s12 = smov [#allocation8]   ;;  %s3711_s29 = scalar_lea.sflag [#allocation3], %s687_s1 }
  0x44   : > { %p3131_p10 = pneg %p3704_p8 }
  0x47   : > { %s695_s22 = scalar_lea.hbm %s4267_s17, %s2472_s24  ;;  %s571_s24 = sshll.u32 %s3467_s12, 4  ;;  %s572_s24 = int_to_ptr.vmem [resolvable:$true] %s571_s24 }
  0x48   : > { %s697_s0 = sshll.u32 %s695_s22, 4  ;;  %s569_s5 = sshll.u32 %s4269_s6, 4  ;;  %s698_s0 = int_to_ptr.hbm [resolvable:$true] %s697_s0  ;;  %s570_s5 = int_to_ptr.hbm [resolvable:$true] %s569_s5 }
  0x49   : > { %s3127_s21 = sshra.s32 %s698_s0, 4  ;;  %s3134_s23 = scalar_lea.hbm %s4267_s17, 16  ;;  %s3128_s21 = int_to_ptr.hbm [resolvable:$true] %s3127_s21 }
  0x4a   : > { %s3129_s28 = scalar_lea.hbm %s3128_s21, 8  ;;  %p3135_p0 = scmp.lt.s32.totalorder %s3128_s21, %s4267_s17 }
  0x4b   : > { %p3130_p9 = scmp.ne.s32.totalorder %s3128_s21, %s3129_s28  ;;  %p3136_p2 = scmp.lt.s32.totalorder %s3134_s23, %s3129_s28 }
  0x4d   : > { %p3132_p11 = pnand %p3131_p10, %p3130_p9  ;;  %p3137_p4 = por %p3136_p2, %p3135_p0 }
  0x4f   : > { %p3133_p13 = pneg %p3132_p11 }
  0x51   : > { %p3138_p1 = pnand %p3137_p4, %p3133_p13 }
  0x53   : > { %3141 = shalt.err (!%p3138_p1)
}
  0x54   : > { %2857 = dma.hbm_to_vmem [thread:$0]  (!%p3704_p8), %s698_s0, 128, %s700_s2, %s3711_s29  }
  0x55   : > { %s4270_s11 = sld [smem:[#allocation46_spill]]  ;;  %s4271_s16 = smov 1  }
  0x56   : > { %s4272_s6 = smov 16   ;;  %s3468_s21 = smov [#allocation11]  }
  0x57   : > { %2835 = dma.hbm_to_vmem [thread:$0]  (!%p3628_p6), %s570_s5, 48, %s572_s24, [#allocation6], %s4272_s6, %s4272_s6, %s4271_s16  }
  0x58   : > { %s608_s28 = sshll.u32 %s3468_s21, 4  ;;  %s4273_s13 = sld [smem:[#allocation48_spill]]  ;;  %s609_s28 = int_to_ptr.vmem [resolvable:$true] %s608_s28 }
  0x59   : > { %s4274_s18 = sld [smem:[#allocation52_spill]]  ;;  %s3469_s24 = smov [#allocation14]  }
  0x5a   : > { %s636_s12 = sshll.u32 %s3469_s24, 4  ;;  %s4275_s21 = smov 4   ;;  %s637_s12 = int_to_ptr.vmem [resolvable:$true] %s636_s12 }
  0x5b   : > { %s606_s22 = sshll.u32 %s4270_s11, 4  ;;  %s4276_s23 = smov 64   ;;  %s607_s22 = int_to_ptr.hbm [resolvable:$true] %s606_s22 }
  0x5c   : > { %2841 = dma.hbm_to_vmem [thread:$0]  (!%p3628_p6), %s607_s22, 48, %s609_s28, [#allocation10], %s4272_s6, %s4272_s6, %s4271_s16  }
  0x5d   : > { %s3470_s19 = smov [#allocation17]   ;;  %s4277_s22 = sld [smem:[#allocation38_spill]] }
  0x5e   : > { %s634_s2 = sshll.u32 %s4273_s13, 4  ;;  %s673_s11 = sshll.u32 %s3470_s19, 4  ;;  %s635_s2 = int_to_ptr.hbm [resolvable:$true] %s634_s2  ;;  %s674_s11 = int_to_ptr.vmem [resolvable:$true] %s673_s11 }
  0x5f   : > { %s671_s5 = sshll.u32 %s4274_s18, 4  ;;  %s4278_s1 = sand.u32 1, %s3453_s26   ;;  %s672_s5 = int_to_ptr.hbm [resolvable:$true] %s671_s5 }
  0x60   : > { %2847 = dma.hbm_to_vmem [thread:$0]  (!%p3628_p6), %s635_s2, 768, %s637_s12, [#allocation13], %s4276_s23, %s4276_s23, %s4275_s21  }
  0x61   : > { %2853 = dma.hbm_to_vmem [thread:$0]  (!%p3628_p6), %s672_s5, 48, %s674_s11, [#allocation16], %s4272_s6, %s4272_s6, %s4271_s16  }
  0x62   : > { %s709_s24 = scalar_lea.vmem [#allocation7], %s4278_s1 }
  0x63   : > { %s712_s28 = scalar_lea.hbm %s4277_s22, %s3457_s27  ;;  %s716_s18 = sshll.u32 %s709_s24, 4  ;;  %s717_s18 = int_to_ptr.vmem [resolvable:$true] %s716_s18 }
  0x64   : > { %s714_s0 = sshll.u32 %s712_s28, 4  ;;  %s3284_s3 = scalar_lea.hbm %s4277_s22, 2  ;;  %s715_s0 = int_to_ptr.hbm [resolvable:$true] %s714_s0 }
  0x65   : > { %s3277_s14 = sshra.s32 %s715_s0, 4  ;;  %s3278_s14 = int_to_ptr.hbm [resolvable:$true] %s3277_s14 }
  0x66   : > { %s3279_s2 = scalar_lea.hbm %s3278_s14, 1  ;;  %p3285_p6 = scmp.lt.s32.totalorder %s3278_s14, %s4277_s22 }
  0x67   : > { %p3280_p1 = scmp.ne.s32.totalorder %s3278_s14, %s3279_s2  ;;  %p3286_p11 = scmp.lt.s32.totalorder %s3284_s3, %s3279_s2 }
  0x69   : > { %p3282_p4 = pnand %p3280_p1, %p3131_p10  ;;  %p3287_p13 = por %p3286_p11, %p3285_p6 }
  0x6b   : > { %p3283_p9 = pneg %p3282_p4 }
  0x6d   : > { %p3288_p0 = pnand %p3287_p13, %p3283_p9 }
  0x6f   : > { %3291 = shalt.err (!%p3288_p0)
}
  0x70   : > { %2860 = dma.hbm_to_vmem [thread:$0]  (!%p3704_p8), %s715_s0, 16, %s717_s18, %s3711_s29  }
  0x71   : > { %725 = sbr.rel (%p3616_p3) target bundleno = 5624 (0x15f8), region = 96  ;;  %s727_s16 = sand.u32 (!%p3616_p3), 1, %s3611_s4  }
  0x72   : > { %s3778_s6 = sand.u32 (!%p3616_p3), 1, %s3449_s25   ;;  %s728_s5 = scalar_lea.sflag (!%p3616_p3), [#allocation3], %s727_s16 }
  0x73   : > { %s3781_s14 = sshll.u32 (!%p3616_p3), %s3778_s6, 3 }
  0x74   : > { %s731_s21 = scalar_lea.vmem (!%p3616_p3), [#allocation2], %s3781_s14 }
  0x76   : > { %3408 = dma.done.wait (%p3676_p12), %s728_s5, 128  }
  0x77   : > { %3410 = vsyncadd (%p3676_p12), %s728_s5, 4294967168  ;;  %p4279_p3 = scmp.eq.s32.totalorder %s3611_s4, 0 }
  0x79   : > { %3412 = dma.done.wait (%p4279_p3), [#allocation6], 128   ;;  %p4280_p8 = pmov %p4279_p3 }
  0x7a   : > { %s745_s18 = scalar_lea.vmem [#allocation7], %s3778_s6 }
  0x7b   : > { %3414 = vsyncadd (%p4280_p8), [#allocation6], 4294967168 }
  0x7c   : > { %3416 = dma.done.wait (%p3676_p12), %s728_s5, 16  }
  0x7d   : > { %3418 = vsyncadd (%p3676_p12), %s728_s5, 4294967280  ;;  %p4281_p10 = pmov %p4279_p3 }
  0x7e   : > { %p4282_p2 = pmov %p4279_p3 }
  0x7f   : > { %3420 = dma.done.wait (%p4281_p10), [#allocation6], 48  }
  0x80   : > { %3422 = vsyncadd (%p4282_p2), [#allocation6], 4294967248  ;;  %p4283_p1 = pmov %p4282_p2 }
  0x82   : > { %3424 = dma.done.wait (%p4283_p1), [#allocation10], 816   ;;  %p4284_p4 = pmov %p4283_p1 }
  0x83   : > { %p4285_p9 = pmov %p4283_p1 }
  0x84   : > { %3426 = vsyncadd (%p4284_p4), [#allocation10], 4294966480 }
  0x85   : > { %3428 = dma.done.wait (%p4285_p9), [#allocation13], 816   ;;  %p4286_p6 = pmov %p4283_p1 }
  0x86   : > { %p4287_p12 = pmov %p4283_p1 }
  0x87   : > { %3430 = vsyncadd (%p4286_p6), [#allocation13], 4294966480 }
  0x88   : > { %3432 = dma.done.wait (%p4287_p12), [#allocation16], 96   ;;  %p4288_p11 = pmov %p4283_p1 }
  0x89   : > { %s4289_s9 = sld [smem:[#allocation39_spill]]  ;;  %v855_v3 = vld [vmem:[%s731_s21] sm:$0xff]  ;;  %v856_v4 = vld [vmem:[#allocation5] sm:$0xff]  ;;  %vm884_vm0 = vcmask 261120   ;;  %v2940_v8 = vld [vmem:[#allocation8] ss:$0 sm:$0xff] }
  0x8a   : > { %3434 = vsyncadd (%p4288_p11), [#allocation16], 4294967200  ;;  %s4290_s19 = sld [smem:[#allocation41_spill]]  ;;  %v3827_v6 = vadd.f32 %v856_v4, %v855_v3  ;;  %vm970_vm1 = vcmask 130048   ;;  %s3471_s3 = smov 112   ;;  %v3472_v27 = vmov 0  }
  0x8b   : > { %s4291_s17 = sld [smem:[#allocation40_spill]]  ;;  %v858_v26 = vld [vmem:[%s745_s18] sm:$0x1]  ;;  %vm992_vm4 = vcmask 64512   ;;  %vm1008_vm5 = vcmask 1043456   ;;  %s3473_s20 = smov 16  }
  0x8c   : > { %v863_v7 = vpack.c.bf16 %v3827_v6, %v3827_v6  ;;  %s4292_s7 = sld [smem:[#allocation43_spill]]  ;;  %vm859_vm2 = vcmp.gt.f32.partialorder %v858_v26, 0.5  ;;  %vm1243_vm10 = vcmask 523264   ;;  %s4111_s11 = scalar_lea.sflag [#allocation20], %s727_s16 }
  0x8d   : > { %v860_v28 = vsel %vm859_vm2, 1, %v3472_v27  ;;  %s4295_s8 = sld [smem:[#allocation44_spill]] }
  0x8e   : > { %v861_v29 = vperm.slane %v860_v28, 0  ;;  %v2753_v28 = vld [vmem:[#allocation14 + $0x8] sm:$0xff]  ;;  %s4296_s18 = sld [smem:[#allocation49_spill]] }
  0x8f   : > { %v2745_v0 = vld [vmem:[%s4289_s9 + $0x8] sm:$0xff]  ;;  %v2744_v2 = vld [vmem:[%s4289_s9] sm:$0xff]  ;;  %s4297_s23 = sld [smem:[#allocation50_spill]] }
  0x90   : > { %v2747_v1 = vld [vmem:[%s4290_s19 + $0x8] sm:$0xff]  ;;  %894 = vmatpush.bf16.msra.mxu0 %v2745_v0  ;;  %v2746_v5 = vld [vmem:[%s4290_s19] sm:$0xff]  ;;  %vm3851_vm3 = vcmp.eq.s32.totalorder %v861_v29, 1  ;;  %v2752_v29 = vld [vmem:[#allocation14] sm:$0xff]  ;;  %s4299_s24 = sld [smem:[#allocation54_spill]] }
  0x91   : > { %927 = vmatpush.bf16.msra.mxu1 %v2747_v1  ;;  %v2939_v11 = vld [vmem:[%s4291_s17] ss:$0 sm:$0xff]  ;;  %v2751_v1 = vld [vmem:[#allocation9 + $0x8] sm:$0xff] }
  0x92   : > { %v2749_v24 = vld [vmem:[%s4292_s7 + $0x8] sm:$0xff]  ;;  %v2748_v25 = vld [vmem:[%s4292_s7] sm:$0xff] }
  0x93   : > { %960 = vmatpush.bf16.msra.mxu2 %v2749_v24  ;;  %v2941_v39 = vld [vmem:[%s4295_s8] ss:$0 sm:$0xff] }
  0x94   : > { %895 = vmatpush.bf16.msra.mxu0 %v2744_v2 }
  0x95   : > { %928 = vmatpush.bf16.msra.mxu1 %v2746_v5 }
  0x97   : > { %2494 = vmatmul.msk.bf16.vlgmr.msra.gmra.mxu0 %vm884_vm0, %v863_v7  ;;  %961 = vmatpush.bf16.msra.mxu2 %v2748_v25 }
  0x98   : > { %2503 = vmatmul.msk.bf16.vlgmr.msra.gmra.mxu1 %vm884_vm0, %v863_v7 }
  0x9a   : > { %2512 = vmatmul.msk.bf16.vlgmr.msra.gmra.mxu2 %vm884_vm0, %v863_v7  ;;  %v2750_v7 = vld [vmem:[#allocation9] sm:$0xff] }
 0x114   : > { %v897_v9 = vpop.f32.mrf.mxu0 }
 0x115   : > { %v930_v10 = vpop.f32.mrf.mxu1  ;;  %v898_v14 = vadd.f32 %v2939_v11, %v897_v9  ;;  %v2942_v11 = vld [vmem:[%s4193_s10] ss:$0 sm:$0xff] }
 0x116   : > { %v931_v12 = vadd.f32 %v2940_v8, %v930_v10 }
 0x117   : > { %v967_v18 = vpack.c.bf16 %v898_v14, %v898_v14 }
 0x118   : > { %v968_v13 = vpack.c.bf16 %v931_v12, %v931_v12 }
 0x11a   : > { %1029 = vrot.lane.b32.xlu0 %v968_v13, %s3471_s3  ;;  %v975_v15 = vsel %vm970_vm1, %v968_v13, 0 }
 0x11b   : > { %984 = vmatpush.bf16.xpose.msra.mxu3 %v975_v15 }
 0x11c   : > { %v899_v16 = vpop.f32.mrf.mxu0 }
 0x11d   : > { %v932_v17 = vpop.f32.mrf.mxu1  ;;  %v963_v42 = vpop.f32.mrf.mxu2 }
 0x11e   : > { %v964_v43 = vadd.f32 %v2941_v39, %v963_v42  ;;  %v3474_v17 = vmov 32.0   ;;  %v2943_v42 = vld [vmem:[#allocation11] ss:$0 sm:$0xff] }
 0x120   : > { %v969_v45 = vpack.c.bf16 %v964_v43, %v964_v43 }
 0x122   : > { %1026 = vrot.lane.b32.xlu0 %v967_v18, %s3471_s3  ;;  %2513 = vmatmul.msk.bf16.vlgmr.msra.gmra.mxu3 %vm970_vm1, %v967_v18  ;;  %v1010_v46 = vsel %vm1008_vm5, %v969_v45, 0 }
 0x123   : > { %1019 = vmatpush.bf16.msrb.mxu0 %v1010_v46  ;;  %1121 = vmatpush.bf16.msrb.mxu3 %v2751_v1 }
 0x125   : > { %v965_v49 = vpop.f32.mrf.mxu2 }
 0x126   : > { %v2755_v49 = vld [vmem:[%s4198_s15 + $0x8] sm:$0xff] }
 0x127   : > { %1122 = vmatpush.bf16.msrb.mxu3 %v2750_v7  ;;  %1198 = vmatpush.bf16.msra.mxu0 %v2753_v28  ;;  %v2759_v7 = vld [vmem:[%s4289_s9 + $0x18] sm:$0xff] }
 0x12b   : > { %1199 = vmatpush.bf16.msra.mxu0 %v2752_v29  ;;  %v2949_v29 = vld [vmem:[%s4295_s8 + $0x1] ss:$0 sm:$0xff] }
 0x18c   : > { %v1030_v19 = vpop.permute.xlu0 %1029 }
 0x18d   : > { %v1035_v20 = vsel %vm970_vm1, %v1030_v19, 0 }
 0x18e   : > { %1044 = vmatpush.bf16.xpose.msrb.mxu1 %v1035_v20 }
 0x194   : > { %v1027_v21 = vpop.permute.xlu0 %1026 }
 0x195   : > { %2515 = vmatmul.msk.bf16.vlgmr.msrb.gmra.mxu1 %vm970_vm1, %v1027_v21 }
 0x1a5   : > { %v986_v22 = vpop.f32.mrf.mxu3 }
 0x1a6   : > { %v990_v35 = vmul.f32 0.25, %v986_v22 }
 0x1a8   : > { %v991_v37 = vsel %vm3851_vm3, -1e+09, %v990_v35 }
 0x1a9   : > { %v993_v38 = vsel %vm992_vm4, %v991_v37, -inf }
 0x1ad   : > { %v988_v23 = vpop.f32.mrf.mxu3 }
 0x212   : > { %v1046_v30 = vpop.f32.mrf.mxu1 }
 0x213   : > { %v1050_v31 = vmul.f32 0.25, %v1046_v30  ;;  %v2757_v30 = vld [vmem:[%s4198_s15 + $0x18] sm:$0xff] }
 0x214   : > { %1251 = vmatpush.bf16.msra.mxu1 %v2757_v30 }
 0x215   : > { %v1051_v33 = vsel %vm3851_vm3, -1e+09, %v1050_v31 }
 0x216   : > { %v1052_v34 = vsel %vm992_vm4, %v1051_v33, -inf }
 0x217   : > { %1053 = vmax.xlane.f32.xlu1 %v1052_v34  ;;  %v2756_v34 = vld [vmem:[%s4198_s15 + $0x10] sm:$0xff] }
 0x218   : > { %1252 = vmatpush.bf16.msra.mxu1 %v2756_v34  ;;  %v2951_v34 = vld [vmem:[#allocation8 + $0x1] ss:$0 sm:$0xff] }
 0x21a   : > { %v1048_v36 = vpop.f32.mrf.mxu1 }
 0x21c   : > { %1253 = vmatpush.bf16.msra.mxu1 %v2755_v49 }
 0x21f   : > { %994 = vmax.xlane.f32.xlu1 %v993_v38 }
 0x28a   : > { %v1054_v40 = vpop.xlane.xlu1 %1053 }
 0x28b   : > { %v1055_v41 = vsub.f32 %v1051_v33, %v1054_v40 }
 0x28d   : > { %v1056_v44 = vmul.f32 1.442695, %v1055_v41 }
 0x28f   : > { %2969 = vpow2.f32 %v1056_v44  ;;  %v2944_v44 = vld [vmem:[#allocation12] ss:$0 sm:$0xff] }
 0x292   : > { %v995_v47 = vpop.xlane.xlu1 %994 }
 0x293   : > { %v996_v48 = vsub.f32 %v991_v37, %v995_v47 }
 0x295   : > { %v2970_v50 = vpop.eup %2969  ;;  %v997_v51 = vmul.f32 1.442695, %v996_v48 }
 0x296   : > { %v1058_v52 = vsel %vm992_vm4, %v2970_v50, 0.0 }
 0x297   : > { %2971 = vpow2.f32 %v997_v51  ;;  %1059 = vadd.xlane.f32.xlu2 %v1058_v52  ;;  %v2945_v51 = vld [vmem:[%s4296_s18] ss:$0 sm:$0xff] }
 0x29d   : > { %v2972_v53 = vpop.eup %2971 }
 0x29e   : > { %v999_v54 = vsel %vm992_vm4, %v2972_v53, 0.0 }
 0x29f   : > { %1000 = vadd.xlane.f32.xlu0 %v999_v54 }
 0x2af   : > { %1065 = vrot.lane.b32.xlu2 %v969_v45, %s3471_s3 }
 0x30a   : > { %v1060_v55 = vpop.xlane.xlu2 %1059 }
 0x30b   : > { %2973 = vrcp.f32 %v1060_v55 }
 0x311   : > { %v2974_v56 = vpop.eup %2973 }
 0x312   : > { %v3868_v57 = vmul.f32 %v2974_v56, %v2970_v50  ;;  %v1066_v58 = vpop.permute.xlu2 %1065  ;;  %v1001_v59 = vpop.xlane.xlu0 %1000  ;;  %v2754_v50 = vld [vmem:[%s4198_s15] sm:$0xff] }
 0x313   : > { %2975 = vrcp.f32 %v1001_v59  ;;  %v1071_v60 = vsel %vm1008_vm5, %v1066_v58, 0  ;;  %1254 = vmatpush.bf16.msra.mxu1 %v2754_v50  ;;  %v2946_v58 = vld [vmem:[%s4297_s23] ss:$0 sm:$0xff] }
 0x314   : > { %1080 = vmatpush.bf16.msrb.mxu2 %v1071_v60  ;;  %v1063_v61 = vpack.c.bf16 %v3868_v57, %v3868_v57  ;;  %2977 = vrcp.f32 %v3474_v17 }
 0x317   : > { %2516 = vmatmul.msk.bf16.vlgmr.msrb.gmra.mxu2 %vm992_vm4, %v1063_v61 }
 0x318   : > { %1328 = vmatpush.bf16.msra.mxu2 %v2759_v7 }
 0x319   : > { %v2976_v62 = vpop.eup %2975 }
 0x31a   : > { %v3874_v63 = vmul.f32 %v2976_v62, %v2972_v53  ;;  %v2978_v18 = vpop.eup %2977 }
 0x31b   : > { %v1135_v19 = vmul.f32 32.0, %v2978_v18  ;;  %vm1139_vm6 = vweird.f32 %v2978_v18 }
 0x31c   : > { %v1004_v0 = vpack.c.bf16 %v3874_v63, %v3874_v63 }
 0x31d   : > { %v1136_v20 = vsub.f32 1.0, %v1135_v19 }
 0x31e   : > { %2514 = vmatmul.msk.bf16.vlgmr.msrb.gmra.mxu0 %vm992_vm4, %v1004_v0 }
 0x31f   : > { %v1137_v21 = vmul.f32 %v2978_v18, %v1136_v20 }
 0x321   : > { %v1138_v22 = vadd.f32 %v2978_v18, %v1137_v21 }
 0x323   : > { %v3887_v23 = vsel %vm1139_vm6, %v2978_v18, %v1138_v22  ;;  %v2947_v22 = vld [vmem:[#allocation15] ss:$0 sm:$0xff] }
 0x39a   : > { %v1082_v2 = vpop.f32.mrf.mxu2 }
 0x39b   : > { %1087 = vrot.lane.b32.xlu1 %v1082_v2, %s3473_s20  ;;  %v1021_v3 = vpop.f32.mrf.mxu0 }
 0x3a2   : > { %v1084_v4 = vpop.f32.mrf.mxu2 }
 0x3a3   : > { %v1023_v5 = vpop.f32.mrf.mxu0 }
 0x40d   : > { %v1088_v8 = vpop.permute.xlu1 %1087 }
 0x40e   : > { %v1090_v9 = vsel %vm970_vm1, %v1021_v3, %v1088_v8  ;;  %v2761_v8 = vld [vmem:[%s4290_s19 + $0x18] sm:$0xff] }
 0x40f   : > { %v1091_v10 = vpack.c.bf16 %v1090_v9, %v1090_v9  ;;  %v2763_v9 = vld [vmem:[%s4292_s7 + $0x18] sm:$0xff]  ;;  %1363 = vmatpush.bf16.msra.mxu3 %v2761_v8 }
 0x410   : > { %1398 = vmatpush.bf16.msrb.mxu0 %v2763_v9 }
 0x411   : > { %2525 = vmatmul.msk.bf16.vlgmr.msrb.gmra.mxu3 %vm884_vm0, %v1091_v10  ;;  %v2758_v10 = vld [vmem:[%s4289_s9 + $0x10] sm:$0xff] }
 0x412   : > { %1329 = vmatpush.bf16.msra.mxu2 %v2758_v10 }
 0x494   : > { %v1124_v12 = vpop.f32.mrf.mxu3 }
 0x495   : > { %v1125_v13 = vadd.f32 %v2942_v11, %v1124_v12  ;;  %v2760_v11 = vld [vmem:[%s4290_s19 + $0x10] sm:$0xff] }
 0x496   : > { %v2762_v12 = vld [vmem:[%s4292_s7 + $0x10] sm:$0xff]  ;;  %1364 = vmatpush.bf16.msra.mxu3 %v2760_v11 }
 0x497   : > { %v1128_v14 = vadd.f32 %v1125_v13, %v3827_v6  ;;  %1399 = vmatpush.bf16.msrb.mxu0 %v2762_v12 }
 0x499   : > { %v1131_v15 = vsel %vm884_vm0, %v1128_v14, 0.0 }
 0x49a   : > { %1132 = vadd.xlane.f32.xlu2 %v1131_v15 }
 0x49c   : > { %v1126_v16 = vpop.f32.mrf.mxu3 }
 0x50d   : > { %v1133_v24 = vpop.xlane.xlu2 %1132 }
 0x50e   : > { %v1141_v25 = vmul.f32 %v3887_v23, %v1133_v24 }
 0x510   : > { %v1142_v26 = vsub.f32 %v1128_v14, %v1141_v25  ;;  %v2948_v25 = vld [vmem:[#allocation17] ss:$0 sm:$0xff] }
 0x512   : > { %v1143_v27 = vmul.f32 %v1142_v26, %v1142_v26 }
 0x514   : > { %v1144_v6 = vsel %vm884_vm0, %v1143_v27, 0.0 }
 0x515   : > { %1145 = vadd.xlane.f32.xlu1 %v1144_v6 }
 0x588   : > { %v1146_v31 = vpop.xlane.xlu1 %1145 }
 0x589   : > { %v1147_v33 = vmul.f32 %v1146_v31, %v3887_v23 }
 0x58b   : > { %v1148_v35 = vadd.f32 1e-05, %v1147_v33  ;;  %v2950_v33 = vld [vmem:[%s4291_s17 + $0x1] ss:$0 sm:$0xff] }
 0x58d   : > { %2979 = vrsqrt.f32 %v1148_v35  ;;  %vm1155_vm8 = vweird.f32 %v1148_v35 }
 0x593   : > { %v2980_v36 = vpop.eup %2979 }
 0x594   : > { %v1150_v37 = vmul.f32 %v2980_v36, %v1148_v35  ;;  %vm1156_vm7 = vweird.f32 %v2980_v36 }
 0x595   : > { %vm1157_vm9 = vmor %vm1155_vm8, %vm1156_vm7 }
 0x596   : > { %v1151_v38 = vmul.f32 %v2980_v36, %v1150_v37 }
 0x598   : > { %v1152_v39 = vmul.f32 0.5, %v1151_v38 }
 0x59a   : > { %v1153_v40 = vsub.f32 1.5, %v1152_v39 }
 0x59c   : > { %v1154_v41 = vmul.f32 %v2980_v36, %v1153_v40 }
 0x59e   : > { %v1158_v43 = vsel %vm1157_vm9, %v2980_v36, %v1154_v41 }
 0x59f   : > { %v1159_v45 = vmul.f32 %v1158_v43, %v1142_v26 }
 0x5a1   : > { %v1163_v46 = vmul.f32 %v2943_v42, %v1159_v45 }
 0x5a3   : > { %v1167_v47 = vadd.f32 %v2944_v44, %v1163_v46 }
 0x5a5   : > { %v1168_v48 = vpack.c.bf16 %v1167_v47, %v1167_v47 }
 0x5a7   : > { %2534 = vmatmul.msk.bf16.vlgmr.msra.gmra.mxu0 %vm884_vm0, %v1168_v48 }
 0x624   : > { %v1201_v52 = vpop.f32.mrf.mxu0 }
 0x625   : > { %v1202_v53 = vadd.f32 %v2945_v51, %v1201_v52 }
 0x627   : > { %v1205_v54 = vmax.f32 %v1202_v53, 0.0 }
 0x629   : > { %v1206_v55 = vpack.c.bf16 %v1205_v54, %v1205_v54 }
 0x62b   : > { %2551 = vmatmul.msk.bf16.vlgmr.msra.gmra.mxu1 %vm1243_vm10, %v1206_v55 }
 0x62c   : > { %v1203_v56 = vpop.f32.mrf.mxu0 }
 0x6a8   : > { %v1256_v59 = vpop.f32.mrf.mxu1 }
 0x6a9   : > { %v1257_v60 = vadd.f32 %v2946_v58, %v1256_v59 }
 0x6ab   : > { %v1260_v61 = vadd.f32 %v1257_v60, %v1167_v47 }
 0x6ad   : > { %v1263_v62 = vsel %vm884_vm0, %v1260_v61, 0.0 }
 0x6ae   : > { %1264 = vadd.xlane.f32.xlu0 %v1263_v62 }
 0x6b0   : > { %v1258_v0 = vpop.f32.mrf.mxu1 }
 0x721   : > { %v1265_v1 = vpop.xlane.xlu0 %1264 }
 0x722   : > { %v1266_v2 = vmul.f32 %v1265_v1, %v3887_v23 }
 0x724   : > { %v1267_v3 = vsub.f32 %v1260_v61, %v1266_v2 }
 0x726   : > { %v1268_v4 = vmul.f32 %v1267_v3, %v1267_v3 }
 0x728   : > { %v1269_v5 = vsel %vm884_vm0, %v1268_v4, 0.0 }
 0x729   : > { %1270 = vadd.xlane.f32.xlu0 %v1269_v5 }
 0x79c   : > { %v1271_v13 = vpop.xlane.xlu0 %1270 }
 0x79d   : > { %v1272_v14 = vmul.f32 %v1271_v13, %v3887_v23 }
 0x79f   : > { %v1273_v15 = vadd.f32 1e-05, %v1272_v14 }
 0x7a1   : > { %2981 = vrsqrt.f32 %v1273_v15  ;;  %vm1280_vm12 = vweird.f32 %v1273_v15 }
 0x7a7   : > { %v2982_v16 = vpop.eup %2981 }
 0x7a8   : > { %v1275_v17 = vmul.f32 %v2982_v16, %v1273_v15  ;;  %vm1281_vm11 = vweird.f32 %v2982_v16 }
 0x7a9   : > { %vm1282_vm13 = vmor %vm1280_vm12, %vm1281_vm11 }
 0x7aa   : > { %v1276_v18 = vmul.f32 %v2982_v16, %v1275_v17 }
 0x7ac   : > { %v1277_v19 = vmul.f32 0.5, %v1276_v18 }
 0x7ae   : > { %v1278_v20 = vsub.f32 1.5, %v1277_v19  ;;  %v2765_v19 = vld [vmem:[#allocation9 + $0x18] sm:$0xff] }
 0x7b0   : > { %v1279_v21 = vmul.f32 %v2982_v16, %v1278_v20 }
 0x7b2   : > { %v1283_v24 = vsel %vm1282_vm13, %v2982_v16, %v1279_v21 }
 0x7b3   : > { %v1284_v26 = vmul.f32 %v1283_v24, %v1267_v3 }
 0x7b5   : > { %v1288_v27 = vmul.f32 %v2947_v22, %v1284_v26 }
 0x7b7   : > { %v3934_v6 = vadd.f32 %v2948_v25, %v1288_v27  ;;  %v2764_v25 = vld [vmem:[#allocation9 + $0x10] sm:$0xff] }
 0x7b9   : > { %v1296_v28 = vpack.c.bf16 %v3934_v6, %v3934_v6 }
 0x7bb   : > { %2565 = vmatmul.msk.bf16.vlgmr.msra.gmra.mxu2 %vm884_vm0, %v1296_v28  ;;  %2578 = vmatmul.msk.bf16.vlgmr.msra.gmra.mxu3 %vm884_vm0, %v1296_v28 }
 0x7bc   : > { %2592 = vmatmul.msk.bf16.vlgmr.msrb.gmra.mxu0 %vm884_vm0, %v1296_v28 }
 0x839   : > { %v1401_v30 = vpop.f32.mrf.mxu0 }
 0x83a   : > { %v1402_v31 = vadd.f32 %v2949_v29, %v1401_v30  ;;  %v2952_v29 = vld [vmem:[%s4193_s10 + $0x1] ss:$0 sm:$0xff] }
 0x83c   : > { %v1407_v35 = vpack.c.bf16 %v1402_v31, %v1402_v31 }
 0x83e   : > { %v1445_v36 = vsel %vm1008_vm5, %v1407_v35, 0  ;;  %v1331_v37 = vpop.f32.mrf.mxu2  ;;  %v1366_v38 = vpop.f32.mrf.mxu3 }
 0x83f   : > { %v1332_v39 = vadd.f32 %v2950_v33, %v1331_v37  ;;  %v1367_v40 = vadd.f32 %v2951_v34, %v1366_v38  ;;  %1454 = vmatpush.bf16.msrb.mxu2 %v1445_v36 }
 0x841   : > { %v1405_v41 = vpack.c.bf16 %v1332_v39, %v1332_v39  ;;  %v1406_v42 = vpack.c.bf16 %v1367_v40, %v1367_v40  ;;  %v1403_v43 = vpop.f32.mrf.mxu0 }
 0x842   : > { %v2771_v43 = vld [vmem:[%s4198_s15 + $0x38] sm:$0xff] }
 0x843   : > { %v1412_v44 = vsel %vm970_vm1, %v1406_v42, 0  ;;  %1464 = vrot.lane.b32.xlu2 %v1406_v42, %s3471_s3  ;;  %1461 = vrot.lane.b32.xlu0 %v1405_v41, %s3471_s3  ;;  %v2766_v42 = vld [vmem:[#allocation14 + $0x10] sm:$0xff] }
 0x844   : > { %1421 = vmatpush.bf16.xpose.msrb.mxu1 %v1412_v44 }
 0x846   : > { %v1333_v45 = vpop.f32.mrf.mxu2  ;;  %v1368_v46 = vpop.f32.mrf.mxu3 }
 0x847   : > { %v2770_v46 = vld [vmem:[%s4198_s15 + $0x30] sm:$0xff] }
 0x84b   : > { %1500 = vrot.lane.b32.xlu2 %v1407_v35, %s3471_s3  ;;  %2593 = vmatmul.msk.bf16.vlgmr.msrb.gmra.mxu1 %vm970_vm1, %v1405_v41  ;;  %v2767_v41 = vld [vmem:[#allocation14 + $0x18] sm:$0xff] }
 0x84c   : > { %1558 = vmatpush.bf16.msra.mxu1 %v2765_v19  ;;  %1632 = vmatpush.bf16.msra.mxu2 %v2767_v41 }
 0x850   : > { %1559 = vmatpush.bf16.msra.mxu1 %v2764_v25  ;;  %1633 = vmatpush.bf16.msra.mxu2 %v2766_v42  ;;  %v2772_v25 = vld [vmem:[%s4289_s9 + $0x20] sm:$0xff] }
 0x89d   : > { %v1465_v47 = vpop.permute.xlu2 %1464 }
 0x89e   : > { %v1470_v48 = vsel %vm970_vm1, %v1465_v47, 0 }
 0x89f   : > { %1479 = vmatpush.bf16.xpose.msrb.mxu3 %v1470_v48 }
 0x8a5   : > { %v1501_v49 = vpop.permute.xlu2 %1500 }
 0x8a6   : > { %v1506_v50 = vsel %vm1008_vm5, %v1501_v49, 0 }
 0x8a7   : > { %1515 = vmatpush.bf16.msra.mxu0 %v1506_v50  ;;  %1686 = vmatpush.bf16.msra.mxu3 %v2771_v43 }
 0x8ab   : > { %1687 = vmatpush.bf16.msra.mxu3 %v2770_v46  ;;  %v2960_v46 = vld [vmem:[#allocation8 + $0x2] ss:$0 sm:$0xff] }
 0x8b5   : > { %v1462_v51 = vpop.permute.xlu0 %1461 }
 0x8b6   : > { %2595 = vmatmul.msk.bf16.vlgmr.msrb.gmra.mxu3 %vm970_vm1, %v1462_v51 }
 0x8c8   : > { %v1423_v52 = vpop.f32.mrf.mxu1 }
 0x8c9   : > { %v1427_v59 = vmul.f32 0.25, %v1423_v52 }
 0x8cb   : > { %v1428_v61 = vsel %vm3851_vm3, -1e+09, %v1427_v59 }
 0x8cc   : > { %v1429_v62 = vsel %vm992_vm4, %v1428_v61, -inf }
 0x8d0   : > { %v1425_v53 = vpop.f32.mrf.mxu1 }
 0x939   : > { %v1481_v54 = vpop.f32.mrf.mxu3 }
 0x93a   : > { %v1485_v55 = vmul.f32 0.25, %v1481_v54  ;;  %v2953_v54 = vld [vmem:[#allocation11 + $0x1] ss:$0 sm:$0xff] }
 0x93c   : > { %v1486_v56 = vsel %vm3851_vm3, -1e+09, %v1485_v55 }
 0x93d   : > { %v1487_v58 = vsel %vm992_vm4, %v1486_v56, -inf }
 0x93e   : > { %1488 = vmax.xlane.f32.xlu1 %v1487_v58 }
 0x941   : > { %v1483_v60 = vpop.f32.mrf.mxu3 }
 0x946   : > { %1430 = vmax.xlane.f32.xlu1 %v1429_v62  ;;  %v2769_v62 = vld [vmem:[%s4198_s15 + $0x28] sm:$0xff] }
 0x947   : > { %1688 = vmatpush.bf16.msra.mxu3 %v2769_v62 }
 0x9b1   : > { %v1489_v0 = vpop.xlane.xlu1 %1488 }
 0x9b2   : > { %v1490_v1 = vsub.f32 %v1486_v56, %v1489_v0  ;;  %v2954_v56 = vld [vmem:[#allocation12 + $0x1] ss:$0 sm:$0xff]  ;;  %v2768_v0 = vld [vmem:[%s4198_s15 + $0x20] sm:$0xff] }
 0x9b3   : > { %1689 = vmatpush.bf16.msra.mxu3 %v2768_v0 }
 0x9b4   : > { %v1491_v2 = vmul.f32 1.442695, %v1490_v1  ;;  %v2955_v1 = vld [vmem:[%s4296_s18 + $0x1] ss:$0 sm:$0xff] }
 0x9b6   : > { %2983 = vpow2.f32 %v1491_v2 }
 0x9b9   : > { %v1431_v3 = vpop.xlane.xlu1 %1430 }
 0x9ba   : > { %v1432_v4 = vsub.f32 %v1428_v61, %v1431_v3 }
 0x9bc   : > { %v2984_v5 = vpop.eup %2983  ;;  %v1433_v7 = vmul.f32 1.442695, %v1432_v4 }
 0x9bd   : > { %v1493_v8 = vsel %vm992_vm4, %v2984_v5, 0.0 }
 0x9be   : > { %2985 = vpow2.f32 %v1433_v7  ;;  %1494 = vadd.xlane.f32.xlu0 %v1493_v8  ;;  %v2956_v8 = vld [vmem:[%s4297_s23 + $0x1] ss:$0 sm:$0xff] }
 0x9c4   : > { %v2986_v9 = vpop.eup %2985 }
 0x9c5   : > { %v1435_v10 = vsel %vm992_vm4, %v2986_v9, 0.0 }
 0x9c6   : > { %1436 = vadd.xlane.f32.xlu1 %v1435_v10 }
 0xa31   : > { %v1495_v11 = vpop.xlane.xlu0 %1494 }
 0xa32   : > { %2987 = vrcp.f32 %v1495_v11 }
 0xa38   : > { %v2988_v12 = vpop.eup %2987 }
 0xa39   : > { %v3964_v13 = vmul.f32 %v2988_v12, %v2984_v5  ;;  %v1437_v14 = vpop.xlane.xlu1 %1436 }
 0xa3a   : > { %2989 = vrcp.f32 %v1437_v14 }
 0xa3b   : > { %v1498_v15 = vpack.c.bf16 %v3964_v13, %v3964_v13 }
 0xa3d   : > { %2596 = vmatmul.msk.bf16.vlgmr.msra.gmra.mxu0 %vm992_vm4, %v1498_v15 }
 0xa40   : > { %v2990_v16 = vpop.eup %2989 }
 0xa41   : > { %v3969_v17 = vmul.f32 %v2990_v16, %v2986_v9 }
 0xa43   : > { %v1440_v18 = vpack.c.bf16 %v3969_v17, %v3969_v17 }
 0xa45   : > { %2594 = vmatmul.msk.bf16.vlgmr.msrb.gmra.mxu2 %vm992_vm4, %v1440_v18 }
 0xaba   : > { %v1517_v20 = vpop.f32.mrf.mxu0 }
 0xabb   : > { %1522 = vrot.lane.b32.xlu2 %v1517_v20, %s3473_s20 }
 0xac2   : > { %v1519_v21 = vpop.f32.mrf.mxu0 }
 0xac3   : > { %v2773_v21 = vld [vmem:[%s4289_s9 + $0x28] sm:$0xff] }
 0xac4   : > { %1765 = vmatpush.bf16.msrb.mxu0 %v2773_v21 }
 0xac8   : > { %v1456_v22 = vpop.f32.mrf.mxu2  ;;  %1766 = vmatpush.bf16.msrb.mxu0 %v2772_v25 }
 0xad0   : > { %v1458_v24 = vpop.f32.mrf.mxu2 }
 0xad1   : > { %v2777_v24 = vld [vmem:[%s4292_s7 + $0x28] sm:$0xff] }
 0xad2   : > { %1835 = vmatpush.bf16.msrb.mxu2 %v2777_v24 }
 0xb15   : > { %v1523_v26 = vpop.permute.xlu2 %1522 }
 0xb16   : > { %v1525_v27 = vsel %vm970_vm1, %v1456_v22, %v1523_v26  ;;  %v2775_v22 = vld [vmem:[%s4290_s19 + $0x28] sm:$0xff]  ;;  %v2774_v26 = vld [vmem:[%s4290_s19 + $0x20] sm:$0xff] }
 0xb17   : > { %v1526_v28 = vpack.c.bf16 %v1525_v27, %v1525_v27  ;;  %1800 = vmatpush.bf16.msrb.mxu1 %v2775_v22  ;;  %v2776_v27 = vld [vmem:[%s4292_s7 + $0x20] sm:$0xff]  ;;  %s3327_s7 = scalar_lea.hbm %s4299_s24, 32 }
 0xb18   : > { %1836 = vmatpush.bf16.msrb.mxu2 %v2776_v27 }
 0xb19   : > { %2606 = vmatmul.msk.bf16.vlgmr.msra.gmra.mxu1 %vm884_vm0, %v1526_v28 }
 0xb1b   : > { %1801 = vmatpush.bf16.msrb.mxu1 %v2774_v26 }
 0xb96   : > { %v1561_v30 = vpop.f32.mrf.mxu1 }
 0xb97   : > { %v1562_v31 = vadd.f32 %v2952_v29, %v1561_v30 }
 0xb99   : > { %v1565_v33 = vadd.f32 %v1562_v31, %v3934_v6 }
 0xb9b   : > { %v1570_v34 = vsel %vm884_vm0, %v1565_v33, 0.0 }
 0xb9c   : > { %1571 = vadd.xlane.f32.xlu1 %v1570_v34 }
 0xb9e   : > { %v1563_v35 = vpop.f32.mrf.mxu1 }
 0xc0f   : > { %v1572_v36 = vpop.xlane.xlu1 %1571 }
 0xc10   : > { %v1573_v37 = vmul.f32 %v1572_v36, %v3887_v23 }
 0xc12   : > { %v1574_v38 = vsub.f32 %v1565_v33, %v1573_v37 }
 0xc14   : > { %v1575_v39 = vmul.f32 %v1574_v38, %v1574_v38 }
 0xc16   : > { %v1576_v40 = vsel %vm884_vm0, %v1575_v39, 0.0 }
 0xc17   : > { %1577 = vadd.xlane.f32.xlu2 %v1576_v40  ;;  %v2958_v40 = vld [vmem:[#allocation17 + $0x1] ss:$0 sm:$0xff] }
 0xc8a   : > { %v1578_v44 = vpop.xlane.xlu2 %1577 }
 0xc8b   : > { %v1579_v45 = vmul.f32 %v1578_v44, %v3887_v23 }
 0xc8d   : > { %v1580_v47 = vadd.f32 1e-05, %v1579_v45  ;;  %v2959_v45 = vld [vmem:[%s4291_s17 + $0x2] ss:$0 sm:$0xff] }
 0xc8f   : > { %2991 = vrsqrt.f32 %v1580_v47  ;;  %vm1587_vm15 = vweird.f32 %v1580_v47 }
 0xc95   : > { %v2992_v48 = vpop.eup %2991 }
 0xc96   : > { %v1582_v49 = vmul.f32 %v2992_v48, %v1580_v47  ;;  %vm1588_vm14 = vweird.f32 %v2992_v48 }
 0xc97   : > { %vm1589_vm2 = vmor %vm1587_vm15, %vm1588_vm14 }
 0xc98   : > { %v1583_v50 = vmul.f32 %v2992_v48, %v1582_v49 }
 0xc9a   : > { %v1584_v51 = vmul.f32 0.5, %v1583_v50 }
 0xc9c   : > { %v1585_v52 = vsub.f32 1.5, %v1584_v51 }
 0xc9e   : > { %v1586_v53 = vmul.f32 %v2992_v48, %v1585_v52 }
 0xca0   : > { %v1590_v55 = vsel %vm1589_vm2, %v2992_v48, %v1586_v53  ;;  %v2961_v53 = vld [vmem:[%s4295_s8 + $0x2] ss:$0 sm:$0xff] }
 0xca1   : > { %v1591_v58 = vmul.f32 %v1590_v55, %v1574_v38  ;;  %v2957_v38 = vld [vmem:[#allocation15 + $0x1] ss:$0 sm:$0xff] }
 0xca3   : > { %v1595_v59 = vmul.f32 %v2953_v54, %v1591_v58 }
 0xca5   : > { %v1599_v60 = vadd.f32 %v2954_v56, %v1595_v59 }
 0xca7   : > { %v1600_v61 = vpack.c.bf16 %v1599_v60, %v1599_v60 }
 0xca9   : > { %2616 = vmatmul.msk.bf16.vlgmr.msra.gmra.mxu2 %vm884_vm0, %v1600_v61 }
 0xd2c   : > { %v1635_v2 = vpop.f32.mrf.mxu2 }
 0xd2d   : > { %v1636_v3 = vadd.f32 %v2955_v1, %v1635_v2 }
 0xd2f   : > { %v1639_v4 = vmax.f32 %v1636_v3, 0.0 }
 0xd31   : > { %v1640_v5 = vpack.c.bf16 %v1639_v4, %v1639_v4 }
 0xd33   : > { %2642 = vmatmul.msk.bf16.vlgmr.msra.gmra.mxu3 %vm1243_vm10, %v1640_v5 }
 0xd34   : > { %v1637_v7 = vpop.f32.mrf.mxu2 }
 0xdb6   : > { %v1691_v9 = vpop.f32.mrf.mxu3 }
 0xdb7   : > { %v1692_v10 = vadd.f32 %v2956_v8, %v1691_v9 }
 0xdb9   : > { %v1695_v11 = vadd.f32 %v1692_v10, %v1599_v60 }
 0xdbb   : > { %v1700_v12 = vsel %vm884_vm0, %v1695_v11, 0.0 }
 0xdbc   : > { %1701 = vadd.xlane.f32.xlu1 %v1700_v12 }
 0xdbe   : > { %v1693_v14 = vpop.f32.mrf.mxu3 }
 0xe2f   : > { %v1702_v15 = vpop.xlane.xlu1 %1701 }
 0xe30   : > { %v1703_v16 = vmul.f32 %v1702_v15, %v3887_v23 }
 0xe32   : > { %v1704_v18 = vsub.f32 %v1695_v11, %v1703_v16 }
 0xe34   : > { %v1705_v19 = vmul.f32 %v1704_v18, %v1704_v18 }
 0xe36   : > { %v1706_v20 = vsel %vm884_vm0, %v1705_v19, 0.0 }
 0xe37   : > { %1707 = vadd.xlane.f32.xlu1 %v1706_v20 }
 0xeaa   : > { %v1708_v28 = vpop.xlane.xlu1 %1707 }
 0xeab   : > { %v1709_v29 = vmul.f32 %v1708_v28, %v3887_v23 }
 0xead   : > { %v1710_v30 = vadd.f32 1e-05, %v1709_v29 }
 0xeaf   : > { %2993 = vrsqrt.f32 %v1710_v30  ;;  %vm1717_vm7 = vweird.f32 %v1710_v30 }
 0xeb5   : > { %v2994_v31 = vpop.eup %2993 }
 0xeb6   : > { %v1712_v33 = vmul.f32 %v2994_v31, %v1710_v30  ;;  %vm1718_vm6 = vweird.f32 %v2994_v31  ;;  %v1731_v30 = vadd.f32 %v3969_v17, %v3874_v63 }
 0xeb7   : > { %vm1719_vm8 = vmor %vm1717_vm7, %vm1718_vm6 }
 0xeb8   : > { %v1713_v34 = vmul.f32 %v2994_v31, %v1712_v33 }
 0xeba   : > { %v1714_v35 = vmul.f32 0.5, %v1713_v34 }
 0xebc   : > { %v1715_v36 = vsub.f32 1.5, %v1714_v35 }
 0xebe   : > { %v1716_v37 = vmul.f32 %v2994_v31, %v1715_v36 }
 0xec0   : > { %v1720_v39 = vsel %vm1719_vm8, %v2994_v31, %v1716_v37 }
 0xec1   : > { %v1721_v41 = vmul.f32 %v1720_v39, %v1704_v18 }
 0xec3   : > { %v1725_v42 = vmul.f32 %v2957_v38, %v1721_v41  ;;  %v1732_v38 = vadd.f32 %v3964_v13, %v3868_v57 }
 0xec5   : > { %v4027_v43 = vadd.f32 %v2958_v40, %v1725_v42 }
 0xec7   : > { %v1733_v44 = vpack.c.bf16 %v4027_v43, %v4027_v43 }
 0xec9   : > { %2656 = vmatmul.msk.bf16.vlgmr.msrb.gmra.mxu0 %vm884_vm0, %v1733_v44  ;;  %2669 = vmatmul.msk.bf16.vlgmr.msrb.gmra.mxu1 %vm884_vm0, %v1733_v44 }
 0xeca   : > { %2683 = vmatmul.msk.bf16.vlgmr.msrb.gmra.mxu2 %vm884_vm0, %v1733_v44  ;;  %v2779_v44 = vld [vmem:[#allocation9 + $0x28] sm:$0xff] }
 0xf46   : > { %v1768_v47 = vpop.f32.mrf.mxu0  ;;  %v1803_v48 = vpop.f32.mrf.mxu1 }
 0xf47   : > { %v1769_v49 = vadd.f32 %v2959_v45, %v1768_v47  ;;  %v1804_v50 = vadd.f32 %v2960_v46, %v1803_v48  ;;  %v2778_v47 = vld [vmem:[#allocation9 + $0x20] sm:$0xff] }
 0xf49   : > { %v1842_v51 = vpack.c.bf16 %v1769_v49, %v1769_v49  ;;  %v1843_v52 = vpack.c.bf16 %v1804_v50, %v1804_v50  ;;  %v2962_v49 = vld [vmem:[%s4193_s10 + $0x2] ss:$0 sm:$0xff] }
 0xf4b   : > { %v1849_v54 = vsel %vm970_vm1, %v1843_v52, 0  ;;  %1901 = vrot.lane.b32.xlu1 %v1843_v52, %s3471_s3  ;;  %1898 = vrot.lane.b32.xlu0 %v1842_v51, %s3471_s3 }
 0xf4c   : > { %1858 = vmatpush.bf16.xpose.msrb.mxu3 %v1849_v54 }
 0xf4d   : > { %v1838_v55 = vpop.f32.mrf.mxu2 }
 0xf4e   : > { %v1839_v56 = vadd.f32 %v2961_v53, %v1838_v55  ;;  %v1770_v58 = vpop.f32.mrf.mxu0  ;;  %v1805_v59 = vpop.f32.mrf.mxu1 }
 0xf50   : > { %v1844_v60 = vpack.c.bf16 %v1839_v56, %v1839_v56 }
 0xf52   : > { %v1882_v61 = vsel %vm1008_vm5, %v1844_v60, 0 }
 0xf53   : > { %1891 = vmatpush.bf16.msra.mxu0 %v1882_v61  ;;  %2684 = vmatmul.msk.bf16.vlgmr.msrb.gmra.mxu3 %vm970_vm1, %v1842_v51  ;;  %v2781_v61 = vld [vmem:[#allocation14 + $0x28] sm:$0xff] }
 0xf54   : > { %1995 = vmatpush.bf16.msra.mxu3 %v2779_v44 }
 0xf55   : > { %v1840_v62 = vpop.f32.mrf.mxu2 }
 0xf56   : > { %v2780_v62 = vld [vmem:[#allocation14 + $0x20] sm:$0xff] }
 0xf57   : > { %2069 = vmatpush.bf16.msrb.mxu0 %v2781_v61 }
 0xf58   : > { %1996 = vmatpush.bf16.msra.mxu3 %v2778_v47 }
 0xf5b   : > { %2070 = vmatpush.bf16.msrb.mxu0 %v2780_v62 }
 0xfbd   : > { %v1902_v0 = vpop.permute.xlu1 %1901  ;;  %v1899_v2 = vpop.permute.xlu0 %1898 }
 0xfbe   : > { %v1907_v1 = vsel %vm970_vm1, %v1902_v0, 0  ;;  %v2785_v0 = vld [vmem:[%s4198_s15 + $0x58] sm:$0xff] }
 0xfbf   : > { %1916 = vmatpush.bf16.xpose.msra.mxu1 %v1907_v1 }
 0xfc6   : > { %2686 = vmatmul.msk.bf16.vlgmr.msra.gmra.mxu1 %vm970_vm1, %v1899_v2 }
 0xfc7   : > { %2123 = vmatpush.bf16.msrb.mxu1 %v2785_v0 }
 0xfd6   : > { %v1860_v3 = vpop.f32.mrf.mxu3 }
 0xfd7   : > { %v1864_v4 = vmul.f32 0.25, %v1860_v3  ;;  %v2784_v3 = vld [vmem:[%s4198_s15 + $0x50] sm:$0xff] }
 0xfd8   : > { %2124 = vmatpush.bf16.msrb.mxu1 %v2784_v3 }
 0xfd9   : > { %v1865_v5 = vsel %vm3851_vm3, -1e+09, %v1864_v4 }
 0xfda   : > { %v1866_v7 = vsel %vm992_vm4, %v1865_v5, -inf }
 0xfdb   : > { %1867 = vmax.xlane.f32.xlu0 %v1866_v7 }
 0xfde   : > { %v1862_v8 = vpop.f32.mrf.mxu3 }
0x1043   : > { %v1918_v9 = vpop.f32.mrf.mxu1 }
0x1044   : > { %v1922_v10 = vmul.f32 0.25, %v1918_v9 }
0x1046   : > { %v1923_v11 = vsel %vm3851_vm3, -1e+09, %v1922_v10 }
0x1047   : > { %v1924_v12 = vsel %vm992_vm4, %v1923_v11, -inf }
0x1048   : > { %1925 = vmax.xlane.f32.xlu2 %v1924_v12  ;;  %v2963_v12 = vld [vmem:[#allocation11 + $0x2] ss:$0 sm:$0xff] }
0x104b   : > { %v1920_v14 = vpop.f32.mrf.mxu1 }
0x104e   : > { %v1868_v15 = vpop.xlane.xlu0 %1867 }
0x104f   : > { %v1869_v16 = vsub.f32 %v1865_v5, %v1868_v15  ;;  %v2964_v15 = vld [vmem:[#allocation12 + $0x2] ss:$0 sm:$0xff] }
0x1051   : > { %v1870_v18 = vmul.f32 1.442695, %v1869_v16 }
0x1053   : > { %2995 = vpow2.f32 %v1870_v18 }
0x1059   : > { %v2996_v19 = vpop.eup %2995 }
0x105a   : > { %v1872_v20 = vsel %vm992_vm4, %v2996_v19, 0.0 }
0x1060   : > { %1937 = vrot.lane.b32.xlu2 %v1844_v60, %s3471_s3  ;;  %s2484_s3 = sshll.u32 %s3778_s6, 4 }
0x1061   : > { %s4061_s30 = scalar_lea.vmem [#allocation19], %s2484_s3 }
0x1062   : > { %s2215_s13 = sshll.u32 %s4061_s30, 4  ;;  %s2216_s13 = int_to_ptr.vmem [resolvable:$true] %s2215_s13 }
0x1089   : > { %1873 = vadd.xlane.f32.xlu2 %v1872_v20 }
0x10bb   : > { %v1926_v21 = vpop.xlane.xlu2 %1925 }
0x10bc   : > { %v1927_v22 = vsub.f32 %v1923_v11, %v1926_v21  ;;  %v2783_v21 = vld [vmem:[%s4198_s15 + $0x48] sm:$0xff] }
0x10bd   : > { %2125 = vmatpush.bf16.msrb.mxu1 %v2783_v21 }
0x10be   : > { %v1928_v24 = vmul.f32 1.442695, %v1927_v22  ;;  %v2782_v22 = vld [vmem:[%s4198_s15 + $0x40] sm:$0xff] }
0x10c0   : > { %2997 = vpow2.f32 %v1928_v24  ;;  %v2965_v24 = vld [vmem:[%s4296_s18 + $0x2] ss:$0 sm:$0xff] }
0x10c1   : > { %2126 = vmatpush.bf16.msrb.mxu1 %v2782_v22 }
0x10c3   : > { %v1938_v32 = vpop.permute.xlu2 %1937 }
0x10c4   : > { %v1943_v25 = vsel %vm1008_vm5, %v1938_v32, 0 }
0x10c5   : > { %1952 = vmatpush.bf16.msra.mxu2 %v1943_v25 }
0x10c6   : > { %v2998_v26 = vpop.eup %2997 }
0x10c7   : > { %v1930_v27 = vsel %vm992_vm4, %v2998_v26, 0.0 }
0x10c8   : > { %1931 = vadd.xlane.f32.xlu1 %v1930_v27 }
0x10fc   : > { %v1874_v28 = vpop.xlane.xlu2 %1873 }
0x10fd   : > { %2999 = vrcp.f32 %v1874_v28 }
0x1103   : > { %v3000_v29 = vpop.eup %2999 }
0x1104   : > { %v1876_v31 = vmul.f32 %v3000_v29, %v2996_v19  ;;  %v2966_v29 = vld [vmem:[%s4297_s23 + $0x2] ss:$0 sm:$0xff] }
0x1106   : > { %v1877_v33 = vpack.c.bf16 %v1876_v31, %v1876_v31  ;;  %v2168_v34 = vadd.f32 %v1876_v31, %v1731_v30 }
0x1108   : > { %v2173_v35 = vmul.f32 0.33333334, %v2168_v34  ;;  %2685 = vmatmul.msk.bf16.vlgmr.msra.gmra.mxu0 %vm992_vm4, %v1877_v33 }
0x110a   : > { %2174 = vst.msk [vmem:[%s4061_s30] sm:$0xff] %vm992_vm4, %v2173_v35 }
0x113b   : > { %v1932_v36 = vpop.xlane.xlu1 %1931 }
0x113c   : > { %3001 = vrcp.f32 %v1932_v36 }
0x1142   : > { %v3002_v37 = vpop.eup %3001 }
0x1143   : > { %v1934_v63 = vmul.f32 %v3002_v37, %v2998_v26 }
0x1145   : > { %v1935_v17 = vpack.c.bf16 %v1934_v63, %v1934_v63  ;;  %v2169_v39 = vadd.f32 %v1934_v63, %v1732_v38 }
0x1147   : > { %v2175_v40 = vmul.f32 0.33333334, %v2169_v39  ;;  %2687 = vmatmul.msk.bf16.vlgmr.msra.gmra.mxu2 %vm992_vm4, %v1935_v17 }
0x1149   : > { %2734 = vst.msk [vmem:[%s4061_s30 + $0x8] sm:$0xff] %vm992_vm4, %v2175_v40 }
0x1185   : > { %v1893_v41 = vpop.f32.mrf.mxu0 }
0x118d   : > { %v1895_v42 = vpop.f32.mrf.mxu0 }
0x11ca   : > { %v1954_v45 = vpop.f32.mrf.mxu2 }
0x11cb   : > { %1959 = vrot.lane.b32.xlu0 %v1954_v45, %s3473_s20  ;;  %s2786_s20 = sshll.u32 %s3611_s4, 4 }
0x11cc   : > { %s2214_s2 = scalar_lea.hbm %s4299_s24, %s2786_s20 }
0x11cd   : > { %s2217_s12 = sshll.u32 %s2214_s2, 4  ;;  %s2218_s12 = int_to_ptr.hbm [resolvable:$true] %s2217_s12 }
0x11ce   : > { %s3321_s5 = sshra.s32 %s2218_s12, 4  ;;  %s3322_s5 = int_to_ptr.hbm [resolvable:$true] %s3321_s5 }
0x11cf   : > { %s3323_s21 = scalar_lea.hbm %s3322_s5, 16  ;;  %p3328_p8 = scmp.lt.s32.totalorder %s3322_s5, %s4299_s24 }
0x11d0   : > { %p3324_p13 = scmp.ne.s32.totalorder %s3322_s5, %s3323_s21  ;;  %p3329_p10 = scmp.lt.s32.totalorder %s3327_s7, %s3323_s21 }
0x11d2   : > { %v1956_v46 = vpop.f32.mrf.mxu2  ;;  %p3325_p0 = pnand %p3324_p13, %p3685_p5  ;;  %p3330_p2 = por %p3329_p10, %p3328_p8 }
0x11d4   : > { %p3326_p3 = pneg %p3325_p0 }
0x11d6   : > { %p3331_p1 = pnand %p3330_p2, %p3326_p3 }
0x123d   : > { %v1960_v48 = vpop.permute.xlu0 %1959 }
0x123e   : > { %v1962_v57 = vsel %vm970_vm1, %v1893_v41, %v1960_v48 }
0x123f   : > { %v1963_v13 = vpack.c.bf16 %v1962_v57, %v1962_v57 }
0x1241   : > { %2697 = vmatmul.msk.bf16.vlgmr.msra.gmra.mxu3 %vm884_vm0, %v1963_v13 }
0x12c4   : > { %v1998_v50 = vpop.f32.mrf.mxu3 }
0x12c5   : > { %v1999_v51 = vadd.f32 %v2962_v49, %v1998_v50 }
0x12c7   : > { %v2002_v52 = vadd.f32 %v1999_v51, %v4027_v43 }
0x12c9   : > { %v2007_v53 = vsel %vm884_vm0, %v2002_v52, 0.0 }
0x12ca   : > { %2008 = vadd.xlane.f32.xlu1 %v2007_v53 }
0x12cc   : > { %v2000_v54 = vpop.f32.mrf.mxu3 }
0x133d   : > { %v2009_v55 = vpop.xlane.xlu1 %2008 }
0x133e   : > { %v2010_v56 = vmul.f32 %v2009_v55, %v3887_v23 }
0x1340   : > { %v2011_v58 = vsub.f32 %v2002_v52, %v2010_v56 }
0x1342   : > { %v2012_v59 = vmul.f32 %v2011_v58, %v2011_v58 }
0x1344   : > { %v2013_v60 = vsel %vm884_vm0, %v2012_v59, 0.0 }
0x1345   : > { %2014 = vadd.xlane.f32.xlu1 %v2013_v60 }
0x13b8   : > { %v2015_v1 = vpop.xlane.xlu1 %2014 }
0x13b9   : > { %v2016_v2 = vmul.f32 %v2015_v1, %v3887_v23 }
0x13bb   : > { %v2017_v4 = vadd.f32 1e-05, %v2016_v2 }
0x13bd   : > { %3003 = vrsqrt.f32 %v2017_v4  ;;  %vm2024_vm3 = vweird.f32 %v2017_v4 }
0x13c3   : > { %v3004_v5 = vpop.eup %3003 }
0x13c4   : > { %v2019_v7 = vmul.f32 %v3004_v5, %v2017_v4  ;;  %vm2025_vm1 = vweird.f32 %v3004_v5 }
0x13c5   : > { %vm2026_vm4 = vmor %vm2024_vm3, %vm2025_vm1 }
0x13c6   : > { %v2020_v8 = vmul.f32 %v3004_v5, %v2019_v7 }
0x13c8   : > { %v2021_v9 = vmul.f32 0.5, %v2020_v8 }
0x13ca   : > { %v2022_v10 = vsub.f32 1.5, %v2021_v9 }
0x13cc   : > { %v2023_v11 = vmul.f32 %v3004_v5, %v2022_v10 }
0x13ce   : > { %v2027_v14 = vsel %vm2026_vm4, %v3004_v5, %v2023_v11 }
0x13cf   : > { %v2028_v16 = vmul.f32 %v2027_v14, %v2011_v58 }
0x13d1   : > { %v2032_v18 = vmul.f32 %v2963_v12, %v2028_v16 }
0x13d3   : > { %v2036_v19 = vadd.f32 %v2964_v15, %v2032_v18 }
0x13d5   : > { %v2037_v20 = vpack.c.bf16 %v2036_v19, %v2036_v19 }
0x13d7   : > { %2707 = vmatmul.msk.bf16.vlgmr.msrb.gmra.mxu0 %vm884_vm0, %v2037_v20 }
0x1454   : > { %v2072_v32 = vpop.f32.mrf.mxu0 }
0x1455   : > { %v2073_v25 = vadd.f32 %v2965_v24, %v2072_v32 }
0x1457   : > { %v2076_v26 = vmax.f32 %v2073_v25, 0.0 }
0x1459   : > { %v2077_v27 = vpack.c.bf16 %v2076_v26, %v2076_v26 }
0x145b   : > { %2733 = vmatmul.msk.bf16.vlgmr.msrb.gmra.mxu1 %vm1243_vm10, %v2077_v27 }
0x145c   : > { %v2074_v28 = vpop.f32.mrf.mxu0 }
0x14d8   : > { %v2128_v30 = vpop.f32.mrf.mxu1 }
0x14d9   : > { %v2129_v31 = vadd.f32 %v2966_v29, %v2128_v30 }
0x14db   : > { %v2132_v33 = vadd.f32 %v2129_v31, %v2036_v19 }
0x14dd   : > { %v2137_v34 = vsel %vm884_vm0, %v2132_v33, 0.0 }
0x14de   : > { %2138 = vadd.xlane.f32.xlu1 %v2137_v34 }
0x14e0   : > { %v2130_v35 = vpop.f32.mrf.mxu1 }
0x1551   : > { %v2139_v36 = vpop.xlane.xlu1 %2138 }
0x1552   : > { %v2140_v37 = vmul.f32 %v2139_v36, %v3887_v23 }
0x1554   : > { %v2141_v38 = vsub.f32 %v2132_v33, %v2140_v37 }
0x1556   : > { %v2142_v63 = vmul.f32 %v2141_v38, %v2141_v38 }
0x1558   : > { %v2143_v17 = vsel %vm884_vm0, %v2142_v63, 0.0 }
0x1559   : > { %2144 = vadd.xlane.f32.xlu0 %v2143_v17 }
0x155a   : > { %3334 = shalt.err (!%p3331_p1)
}
0x155b   : > { %s3475_s16 = smov 128   ;;  %s3476_s30 = smov 8   ;;  %v2967_v57 = vld [vmem:[#allocation15 + $0x2] ss:$0 sm:$0xff]  ;;  %v2968_v49 = vld [vmem:[#allocation17 + $0x2] ss:$0 sm:$0xff]  ;;  %v1730_v51 = vadd.f32 %v4027_v43, %v3934_v6 }
0x155c   : > { %2824 = dma.vmem_to_hbm [thread:$0]  (%p3685_p5), %s2216_s13, 256, %s2218_s12, %s4111_s11, %s3475_s16, %s3475_s16, %s3476_s30  }
0x155d   : > { %s2738_s7 = sshll.u32 %s3611_s4, 3  ;;  %s4300_s13 = sld [smem:[#allocation53_spill]] }
0x155e   : > { %s839_s5 = scalar_lea.vmem [#allocation18], %s3781_s14  ;;  %s4301_s4 = sld [smem:[#allocation55_spill]] }
0x155f   : > { %s2201_s21 = sshll.u32 %s839_s5, 4  ;;  %s853_s30 = scalar_lea.vmem [#allocation21], %s3781_s14  ;;  %s2202_s21 = int_to_ptr.vmem [resolvable:$true] %s2201_s21 }
0x1560   : > { %s4136_s1 = sshll.u32 %s853_s30, 4  ;;  %s2179_s2 = scalar_lea.sflag [#allocation4], %s3778_s6  ;;  %s2233_s1 = int_to_ptr.vmem [resolvable:$true] %s4136_s1 }
0x1563   : > { %s2199_s12 = scalar_lea.hbm %s4300_s13, %s2738_s7  ;;  %s3355_s0 = scalar_lea.hbm %s4300_s13, 16 }
0x1564   : > { %s2203_s3 = sshll.u32 %s2199_s12, 4  ;;  %s2230_s20 = scalar_lea.hbm %s4301_s4, %s2738_s7  ;;  %s2204_s3 = int_to_ptr.hbm [resolvable:$true] %s2203_s3 }
0x1565   : > { %s2234_s16 = sshll.u32 %s2230_s20, 4  ;;  %s3349_s12 = sshra.s32 %s2204_s3, 4  ;;  %s3350_s12 = int_to_ptr.hbm [resolvable:$true] %s3349_s12  ;;  %s2235_s16 = int_to_ptr.hbm [resolvable:$true] %s2234_s16 }
0x1566   : > { %s3351_s8 = scalar_lea.hbm %s3350_s12, 8  ;;  %p3356_p12 = scmp.lt.s32.totalorder %s3350_s12, %s4300_s13 }
0x1567   : > { %p3352_p4 = scmp.ne.s32.totalorder %s3350_s12, %s3351_s8  ;;  %p3357_p11 = scmp.lt.s32.totalorder %s3355_s0, %s3351_s8 }
0x1569   : > { %p3353_p9 = pnand %p3352_p4, %p3685_p5  ;;  %p3358_p13 = por %p3357_p11, %p3356_p12 }
0x156b   : > { %p3354_p6 = pneg %p3353_p9 }
0x156d   : > { %p3359_p0 = pnand %p3358_p13, %p3354_p6 }
0x15cc   : > { %v2145_v39 = vpop.xlane.xlu0 %2144 }
0x15cd   : > { %v2146_v40 = vmul.f32 %v2145_v39, %v3887_v23 }
0x15cf   : > { %v2147_v41 = vadd.f32 1e-05, %v2146_v40 }
0x15d1   : > { %3005 = vrsqrt.f32 %v2147_v41  ;;  %vm2154_vm9 = vweird.f32 %v2147_v41 }
0x15d7   : > { %v3006_v42 = vpop.eup %3005 }
0x15d8   : > { %v2149_v44 = vmul.f32 %v3006_v42, %v2147_v41  ;;  %vm2155_vm5 = vweird.f32 %v3006_v42 }
0x15d9   : > { %vm2156_vm10 = vmor %vm2154_vm9, %vm2155_vm5 }
0x15da   : > { %v2150_v45 = vmul.f32 %v3006_v42, %v2149_v44 }
0x15dc   : > { %v2151_v46 = vmul.f32 0.5, %v2150_v45 }
0x15de   : > { %v2152_v47 = vsub.f32 1.5, %v2151_v46 }
0x15e0   : > { %v2153_v48 = vmul.f32 %v3006_v42, %v2152_v47 }
0x15e2   : > { %v2157_v23 = vsel %vm2156_vm10, %v3006_v42, %v2153_v48 }
0x15e3   : > { %v2158_v13 = vmul.f32 %v2157_v23, %v2141_v38 }
0x15e5   : > { %v2162_v50 = vmul.f32 %v2967_v57, %v2158_v13 }
0x15e7   : > { %v2166_v52 = vadd.f32 %v2968_v49, %v2162_v50 }
0x15e9   : > { %v2167_v53 = vadd.f32 %v2166_v52, %v1730_v51  ;;  %2170 = vst.msk [vmem:[%s839_s5] sm:$0xff] %vm884_vm0, %v2166_v52 }
0x15ea   : > { %3362 = shalt.err (!%p3359_p0)
}
0x15eb   : > { %2823 = dma.vmem_to_hbm [thread:$0]  (%p3685_p5), %s2202_s21, 128, %s2204_s3, %s2179_s2   ;;  %v2171_v6 = vmul.f32 0.33333334, %v2167_v53 }
0x15ec   : > { %s3377_s6 = sshra.s32 %s2235_s16, 4  ;;  %s3383_s5 = scalar_lea.hbm %s4301_s4, 16  ;;  %s3378_s6 = int_to_ptr.hbm [resolvable:$true] %s3377_s6 }
0x15ed   : > { %2172 = vst.msk [vmem:[%s853_s30] sm:$0xff] %vm884_vm0, %v2171_v6  ;;  %s3379_s14 = scalar_lea.hbm %s3378_s6, 8  ;;  %p3384_p2 = scmp.lt.s32.totalorder %s3378_s6, %s4301_s4 }
0x15ee   : > { %p3380_p3 = scmp.ne.s32.totalorder %s3378_s6, %s3379_s14  ;;  %p3385_p1 = scmp.lt.s32.totalorder %s3383_s5, %s3379_s14 }
0x15f0   : > { %p3381_p8 = pnand %p3380_p3, %p3685_p5  ;;  %p3386_p4 = por %p3385_p1, %p3384_p2 }
0x15f2   : > { %p3382_p10 = pneg %p3381_p8 }
0x15f4   : > { %p3387_p9 = pnand %p3386_p4, %p3382_p10 }
0x15f6   : > { %3390 = shalt.err (!%p3387_p9)
}
0x15f7   : > { %2825 = dma.vmem_to_hbm [thread:$0]  (%p3685_p5), %s2233_s1, 128, %s2235_s16, %s4111_s11  }
0x15f8 PF: > { %s4302_s21 = sld [smem:[#allocation31_spill]]  ;;  %p4304_p6 = scmp.ge.s32.totalorder %s3457_s27, 2 }
0x15fa   : > { %p2862_p12 = pnand %p4304_p6, %p3689_p7 }
0x15fc   : > { %p2863_p11 = pneg %p2862_p12 }
0x15fe   : > { %s2246_s30 = sand.u32 1, %s4302_s21  }
0x15ff   : > { %s2247_s2 = scalar_lea.sflag [#allocation4], %s2246_s30 }
0x1600   : > { %3436 = dma.done.wait (%p2863_p11), %s2247_s2, 128  }
0x1601   : > { %3438 = vsyncadd (%p2863_p11), %s2247_s2, 4294967168  ;;  %s4305_s29 = sadd.s32 4294967294, %s3457_s27  }
0x1602   : > { %s2256_s0 = sand.u32 1, %s4305_s29  }
0x1603   : > { %s2257_s20 = scalar_lea.sflag [#allocation20], %s2256_s0 }
0x1604   : > { %3440 = dma.done.wait (%p2863_p11), %s2257_s20, 384  }
0x1605   : > { %3442 = vsyncadd (%p2863_p11), %s2257_s20, 4294966912  ;;  %s4306_s27 = sld [smem:[#allocation32_spill]]  ;;  %s4308_s2 = smov %s3449_s25 }
0x1606   : > { %s4307_s28 = sld [smem:[#allocation33_spill]]  ;;  %s4309_s25 = smov %s3453_s26 }
0x160b   : > { %p42_p5 = scmp.ge.s32.totalorder %s4306_s27, 4  }
0x160c   : > { %s4310_s26 = smov %s4307_s28 }
0x160d   :  { %44 = sbr.rel (!%p42_p5) target bundleno = 32 (0x20), region = 249 }
0x1612   :  { %2273 = vsyncpa [#allocation3], 1 }
0x1613   :  { %2275 = vsyncpa [#allocation3 + $0x1], 1 }
0x1614   :  { %2276 = vsyncpa [#allocation6], 1 }
0x1615   :  { %2277 = vsyncpa [#allocation10], 1 }
0x1616   :  { %2278 = vsyncpa [#allocation13], 1 }
0x1617   :  { %2279 = vsyncpa [#allocation16], 1 }
0x1618   :  { %2280 = vsyncpa [#allocation4], 1 }
0x1619   :  { %2282 = vsyncpa [#allocation4 + $0x1], 1 }
0x161a   :  { %2283 = vsyncpa [#allocation20], 1 }
0x161b   :  { %2285 = vsyncpa [#allocation20 + $0x1], 1 }

</bundles_post_ra>
